<compile_context>
chip_gen: v7x
topology: tpu7x:2x2x1
jax: 0.10.0
libtpu: 0.0.40
codegen_flags: <defaults>
</compile_context>

<pallas_src>
import jax
import jax.numpy as jnp
from jax.experimental import pallas as pl
from jax.experimental.pallas import tpu as pltpu

# Problem sizes (small, consistent with the module's forward).
B, C_IN, H, W = 2, 4, 16, 16
C_FEAT = 32
NUM_CLASSES = 10
KH, KW = 3, 3

HW = H * W                      # 256 spatial positions per sample
K_RAW = KH * KW * C_IN          # 36  (im2col contraction dim; NOT padded in HBM)
NC_PAD = 128                    # pad classes to a lane-dense output store


def combined_kernel(p_ref, wc_ref, bc_ref, wl_ref, bl_ref, o_ref):
    """One grid step: full forward for TB samples.

    p_ref  : (TB*H*W, K_RAW)   im2col patches (flat rows, lane dim = 36)
    wc_ref : (K_RAW, C_FEAT)   conv weight, im2col-flattened
    bc_ref : (1, C_FEAT)       conv bias
    wl_ref : (C_FEAT, NC_PAD)  linear weight^T * 1/(H*W), class-padded
    bl_ref : (1, NC_PAD)       linear bias, class-padded
    o_ref  : (TB, NC_PAD)      padded logits
    """
    tb = o_ref.shape[0]
    hw = p_ref.shape[0] // tb
    c_feat = wc_ref.shape[1]

    # --- encoder: 3x3 "same" conv as a single im2col matmul (MXU) ---
    acc = jnp.dot(p_ref[...], wc_ref[...], preferred_element_type=jnp.float32)
    acc = jnp.maximum(acc + bc_ref[...], 0.0)              # bias + ReLU (VPU)

    # global average pool: sum over the spatial axis; the 1/(H*W) scale is
    # already folded into wl.  (TB*HW, C_FEAT) -> (TB, HW, C_FEAT) is a free
    # sublane split (HW % 8 == 0).
    feat = jnp.sum(acc.reshape(tb, hw, c_feat), axis=1)    # (TB, C_FEAT)

    # --- eval_ : linear classifier (lane-dense padded output) ---
    logits = jnp.dot(feat, wl_ref[...],
                     preferred_element_type=jnp.float32) + bl_ref[...]
    o_ref[...] = logits.astype(o_ref.dtype)


def _pick_tb(n):
    """Samples per grid step: amortize per-step overhead for big noise batches,
    keep batch padding small for tiny n.  Patch block stays ~0.3-1.2 MiB."""
    if n >= 32:
        return 32
    if n >= 16:
        return 16
    return 8


def combined_forward(x_nchw, conv_w_oihw, conv_b, lin_w_oi, lin_b):
    """Wrapper: layout plumbing (im2col, padding, weight reshapes) + pallas_call.

    x_nchw      : (N, C_IN, H, W)           -- PyTorch layout, any N
    conv_w_oihw : (C_FEAT, C_IN, KH, KW)    -- PyTorch Conv2d weight layout
    conv_b      : (C_FEAT,)
    lin_w_oi    : (NUM_CLASSES, C_FEAT)     -- PyTorch Linear weight layout
    lin_b       : (NUM_CLASSES,)
    returns     : (N, NUM_CLASSES) float32 logits
    """
    n = x_nchw.shape[0]
    tb = _pick_tb(n)
    n_pad = pl.cdiv(n, tb) * tb

    # NCHW -> NHWC, zero-pad spatially for the 3x3 "same" conv.
    x_nhwc = jnp.transpose(x_nchw, (0, 2, 3, 1)).astype(jnp.float32)
    x_sp = jnp.pad(x_nhwc, ((0, 0), (1, 1), (1, 1), (0, 0)))

    # im2col: 9 shifted views concatenated on the channel axis
    #   -> (N, H*W, KH*KW*C_IN), tap order (kh, kw) outer, channel inner.
    taps = [x_sp[:, kh:kh + H, kw:kw + W, :]
            for kh in range(KH) for kw in range(KW)]
    patches = jnp.concatenate(taps, axis=-1).reshape(n, HW, K_RAW)
    # Pad the sample axis to a multiple of TB, then flatten sample/spatial.
    patches = jnp.pad(patches, ((0, n_pad - n), (0, 0), (0, 0)))
    patches = patches.reshape(n_pad * HW, K_RAW)

    # Conv weight OIHW -> (KH*KW*C_IN, C_FEAT), same tap/channel order.
    wc = jnp.transpose(conv_w_oihw, (2, 3, 1, 0)).reshape(K_RAW, C_FEAT)
    bc = conv_b.reshape(1, C_FEAT)

    # PyTorch Linear: y = feat_mean @ W.T + b.  Fold the 1/(H*W) GAP scale
    # into W.T and pad classes 10 -> 128 for a lane-dense output store.
    wl = jnp.transpose(lin_w_oi, (1, 0)) * (1.0 / float(HW))
    wl = jnp.pad(wl, ((0, 0), (0, NC_PAD - NUM_CLASSES)))
    bl = jnp.pad(lin_b.reshape(1, NUM_CLASSES),
                 ((0, 0), (0, NC_PAD - NUM_CLASSES)))

    grid = (n_pad // tb,)
    out = pl.pallas_call(
        combined_kernel,
        out_shape=jax.ShapeDtypeStruct((n_pad, NC_PAD), jnp.float32),
        grid_spec=pltpu.PrefetchScalarGridSpec(
            num_scalar_prefetch=0,
            grid=grid,
            in_specs=[
                # sample-batch tile of im2col patches (rows of tb*HW)
                pl.BlockSpec((tb * HW, K_RAW), lambda i: (i, 0)),
                # weights/biases: same (whole) block every step
                pl.BlockSpec((K_RAW, C_FEAT), lambda i: (0, 0)),
                pl.BlockSpec((1, C_FEAT), lambda i: (0, 0)),
                pl.BlockSpec((C_FEAT, NC_PAD), lambda i: (0, 0)),
                pl.BlockSpec((1, NC_PAD), lambda i: (0, 0)),
            ],
            out_specs=pl.BlockSpec((tb, NC_PAD), lambda i: (i, 0)),
        ),
        compiler_params=pltpu.CompilerParams(
            # sample axis is independent -> megacore-shardable on v7x
            dimension_semantics=("parallel",),
            # tiny blocks (~3 MiB total double-buffered); comfortable headroom
            vmem_limit_bytes=32 * 1024 * 1024,
        ),
    )(patches, wc, bc, wl, bl)

    # Strip batch padding and class padding (wrapper-side layout plumbing).
    return out[:n, :NUM_CLASSES]


def reference_forward(x_nchw, conv_w_oihw, conv_b, lin_w_oi, lin_b):
    """Pure-JAX reference replicating the PyTorch semantics."""
    y = jax.lax.conv_general_dilated(
        x_nchw, conv_w_oihw, window_strides=(1, 1), padding="SAME",
        dimension_numbers=("NCHW", "OIHW", "NCHW"))
    y = y + conv_b[None, :, None, None]
    y = jnp.maximum(y, 0.0)
    feat = jnp.mean(y, axis=(2, 3))                      # (N, C_FEAT)
    return feat @ lin_w_oi.T + lin_b                     # (N, NUM_CLASSES)


if __name__ == "__main__":
    key = jax.random.PRNGKey(0)
    kx, kwc, kbc, kwl, kbl, kn = jax.random.split(key, 6)

    x = jax.random.normal(kx, (B, C_IN, H, W), jnp.float32)
    conv_w = jax.random.normal(kwc, (C_FEAT, C_IN, KH, KW), jnp.float32) * 0.1
    conv_b = jax.random.normal(kbc, (C_FEAT,), jnp.float32) * 0.1
    lin_w = jax.random.normal(kwl, (NUM_CLASSES, C_FEAT), jnp.float32) * 0.1
    lin_b = jax.random.normal(kbl, (NUM_CLASSES,), jnp.float32) * 0.1

    # Small-batch check (B=2, one grid step).
    out = jax.block_until_ready(
        combined_forward(x, conv_w, conv_b, lin_w, lin_b))
    ref = reference_forward(x, conv_w, conv_b, lin_w, lin_b)
    assert out.shape == (B, NUM_CLASSES)
    assert jnp.allclose(out, ref, atol=1e-4, rtol=1e-4), (
        f"max abs err {jnp.max(jnp.abs(out - ref))}")

    # Batched randomized-smoothing-style check: many noise samples behind one
    # pallas_call (this is the main end-to-end perf lever).
    N = 32
    xs = x[:1] + 0.25 * jax.random.normal(kn, (N, C_IN, H, W), jnp.float32)
    out_n = jax.block_until_ready(
        combined_forward(xs, conv_w, conv_b, lin_w, lin_b))
    ref_n = reference_forward(xs, conv_w, conv_b, lin_w, lin_b)
    assert out_n.shape == (N, NUM_CLASSES)
    assert jnp.allclose(out_n, ref_n, atol=1e-4, rtol=1e-4), (
        f"max abs err {jnp.max(jnp.abs(out_n - ref_n))}")

    print("KERNEL_OK")
</pallas_src>

<mosaic_0001>
module attributes {stable_mosaic.version = 11 : i64} {
  func.func @combined_kernel(%arg0: i32, %arg1: memref<2048x36xf32, #tpu.memory_space<vmem>>, %arg2: memref<36x32xf32, #tpu.memory_space<vmem>>, %arg3: memref<1x32xf32, #tpu.memory_space<vmem>>, %arg4: memref<32x128xf32, #tpu.memory_space<vmem>>, %arg5: memref<1x128xf32, #tpu.memory_space<vmem>>, %arg6: memref<8x128xf32, #tpu.memory_space<vmem>>) attributes {dimension_semantics = [#tpu.dimension_semantics<parallel>], iteration_bounds = array<i64: 1>, scalar_prefetch = 0 : i64, scratch_operands = 0 : i64, tpu.core_type = #tpu.core_type<tc>, window_params = [{transform_indices = @transform_0, window_bounds = array<i64: 2048, 36>}, {pipeline_mode = #tpu.pipeline_mode<synchronous>, transform_indices = @transform_1, window_bounds = array<i64: 36, 32>}, {pipeline_mode = #tpu.pipeline_mode<synchronous>, transform_indices = @transform_2, window_bounds = array<i64: 1, 32>}, {pipeline_mode = #tpu.pipeline_mode<synchronous>, transform_indices = @transform_3, window_bounds = array<i64: 32, 128>}, {pipeline_mode = #tpu.pipeline_mode<synchronous>, transform_indices = @transform_4, window_bounds = array<i64: 1, 128>}, {transform_indices = @transform_5, window_bounds = array<i64: 8, 128>}]} {
    %c0 = arith.constant 0 : index
    %c0_0 = arith.constant 0 : index
    %0 = vector.load %arg1[%c0, %c0_0] : memref<2048x36xf32, #tpu.memory_space<vmem>>, vector<2048x36xf32>
    %c0_1 = arith.constant 0 : index
    %c0_2 = arith.constant 0 : index
    %1 = vector.load %arg2[%c0_1, %c0_2] : memref<36x32xf32, #tpu.memory_space<vmem>>, vector<36x32xf32>
    %cst = arith.constant dense<0.000000e+00> : vector<2048x32xf32>
    %2 = tpu.matmul %0, %1, %cst {dimension_numbers = #tpu.dot_dimension_numbers<[1], [0], [0], [1], [0, 0, 1, 1], [], []>} : vector<2048x36xf32>, vector<36x32xf32>, vector<2048x32xf32> -> vector<2048x32xf32>
    %c0_3 = arith.constant 0 : index
    %c0_4 = arith.constant 0 : index
    %3 = vector.load %arg3[%c0_3, %c0_4] : memref<1x32xf32, #tpu.memory_space<vmem>>, vector<1x32xf32>
    %4 = vector.broadcast %3 : vector<1x32xf32> to vector<2048x32xf32>
    %5 = arith.addf %2, %4 : vector<2048x32xf32>
    %cst_5 = arith.constant 0.000000e+00 : f32
    %6 = vector.broadcast %cst_5 : f32 to vector<2048x32xf32>
    %7 = arith.maximumf %5, %6 : vector<2048x32xf32>
    %8 = vector.shape_cast %7 : vector<2048x32xf32> to vector<8x256x32xf32>
    %cst_6 = arith.constant dense<0.000000e+00> : vector<8x32xf32>
    %9 = vector.multi_reduction <add>, %8, %cst_6 [1] : vector<8x256x32xf32> to vector<8x32xf32>
    %c0_7 = arith.constant 0 : index
    %c0_8 = arith.constant 0 : index
    %10 = vector.load %arg4[%c0_7, %c0_8] : memref<32x128xf32, #tpu.memory_space<vmem>>, vector<32x128xf32>
    %cst_9 = arith.constant dense<0.000000e+00> : vector<8x128xf32>
    %11 = tpu.matmul %9, %10, %cst_9 {dimension_numbers = #tpu.dot_dimension_numbers<[1], [0], [0], [1], [0, 0, 1, 1], [], []>} : vector<8x32xf32>, vector<32x128xf32>, vector<8x128xf32> -> vector<8x128xf32>
    %c0_10 = arith.constant 0 : index
    %c0_11 = arith.constant 0 : index
    %12 = vector.load %arg5[%c0_10, %c0_11] : memref<1x128xf32, #tpu.memory_space<vmem>>, vector<1x128xf32>
    %13 = vector.broadcast %12 : vector<1x128xf32> to vector<8x128xf32>
    %14 = arith.addf %11, %13 : vector<8x128xf32>
    %c0_12 = arith.constant 0 : index
    %c0_13 = arith.constant 0 : index
    %15 = vector.load %arg6[%c0_12, %c0_13] : memref<8x128xf32, #tpu.memory_space<vmem>>, vector<8x128xf32>
    tpu.vector_store %arg6[%c0_12, %c0_13], %14 {strides = array<i32>} : memref<8x128xf32, #tpu.memory_space<vmem>>, vector<8x128xf32>,
    return
  }
  func.func @transform_0(%arg0: i32) -> (i32, i32) {
    %c0_i32 = arith.constant 0 : i32
    %c0_i32_0 = arith.constant 0 : i32
    return %arg0, %c0_i32 : i32, i32
  }
  func.func @transform_1(%arg0: i32) -> (i32, i32) {
    %c0_i32 = arith.constant 0 : i32
    %c0_i32_0 = arith.constant 0 : i32
    %c0_i32_1 = arith.constant 0 : i32
    return %c0_i32, %c0_i32_0 : i32, i32
  }
  func.func @transform_2(%arg0: i32) -> (i32, i32) {
    %c0_i32 = arith.constant 0 : i32
    %c0_i32_0 = arith.constant 0 : i32
    %c0_i32_1 = arith.constant 0 : i32
    return %c0_i32, %c0_i32_0 : i32, i32
  }
  func.func @transform_3(%arg0: i32) -> (i32, i32) {
    %c0_i32 = arith.constant 0 : i32
    %c0_i32_0 = arith.constant 0 : i32
    %c0_i32_1 = arith.constant 0 : i32
    return %c0_i32, %c0_i32_0 : i32, i32
  }
  func.func @transform_4(%arg0: i32) -> (i32, i32) {
    %c0_i32 = arith.constant 0 : i32
    %c0_i32_0 = arith.constant 0 : i32
    %c0_i32_1 = arith.constant 0 : i32
    return %c0_i32, %c0_i32_0 : i32, i32
  }
  func.func @transform_5(%arg0: i32) -> (i32, i32) {
    %c0_i32 = arith.constant 0 : i32
    %c0_i32_0 = arith.constant 0 : i32
    return %arg0, %c0_i32 : i32, i32
  }
}

</mosaic_0001>

<bundles_post_ra>
// kernel: tpu_custom_call.1
= control target key start
LH: loop header
LB: loop body
LE: loop exit
PB: predicated region body
PF: predicated region fallthrough
CT: control target
= control target key end

     0   :  { %vm289_vm0 = vcmask 293888   ;;  %vm1058_vm1 = vcmask 1043456   ;;  %s6166_s0 = inlined_call_operand.vmem [shape: f32[2048,36], index: 0, kind: input, shape index: {}]   ;;  %s6167_s1 = inlined_call_operand.vmem [shape: f32[36,32], index: 1, kind: input, shape index: {}]   ;;  %s6168_s2 = inlined_call_operand.vmem [shape: f32[1,32], index: 2, kind: input, shape index: {}]   ;;  %s6169_s3 = inlined_call_operand.vmem [shape: f32[32,128], index: 3, kind: input, shape index: {}]   ;;  %s6170_s4 = inlined_call_operand.vmem [shape: f32[1,128], index: 4, kind: input, shape index: {}]   ;;  %s6171_s5 = inlined_call_operand.hbm [shape: f32[8,128], index: 5, kind: output, shape index: {}]  }
   0x1   :  { %v277_v0 = vld [vmem:[%s6167_s1] sm:$0xff]  ;;  %v278_v1 = vld [vmem:[%s6167_s1 + $0x8] sm:$0xff]  ;;  %v279_v2 = vld [vmem:[%s6167_s1 + $0x10] sm:$0xff] }
   0x2   :  { %v4267_v3 = vpack.c.bf16 %v278_v1, %v277_v0  ;;  %v280_v4 = vld [vmem:[%s6167_s1 + $0x18] sm:$0xff]  ;;  %v21_v5 = vld [vmem:[%s6166_s0] sm:$0xff]  ;;  %v22_v8 = vld [vmem:[%s6166_s0 + $0x8] sm:$0xff] }
   0x3   :  { %v4271_v6 = vpack.c.bf16 %v280_v4, %v279_v2  ;;  %3872 = vmatprep.mubr.msk.f32.mxu0 %vm289_vm0, %v21_v5  ;;  %v281_v7 = vld [vmem:[%s6167_s1 + $0x20] sm:$0xf]  ;;  %v23_v9 = vld [vmem:[%s6166_s0 + $0x10] sm:$0xff]  ;;  %v152_v11 = vld [vmem:[%s6166_s0 + $0x418] sm:$0xff] }
   0x4   :  { %4268 = vmatprep.subr.bf16.mxu0 %v4267_v3  ;;  %4281 = vmatprep.subr.bf16.mxu1 %v4267_v3  ;;  %v151_v10 = vld [vmem:[%s6166_s0 + $0x410] sm:$0xff]  ;;  %v153_v12 = vld [vmem:[%s6166_s0 + $0x420] sm:$0xff]  ;;  %v24_v13 = vld [vmem:[%s6166_s0 + $0x18] sm:$0xff] }
   0x5   :  { %4270 = vmatpush3.bf16.msra.mxu0 %v4267_v3  ;;  %4284 = vmatpush3.bf16.msra.mxu1 %v4267_v3  ;;  %v25_v14 = vld [vmem:[%s6166_s0 + $0x20] sm:$0xff]  ;;  %v154_v15 = vld [vmem:[%s6166_s0 + $0x428] sm:$0xff]  ;;  %v155_v16 = vld [vmem:[%s6166_s0 + $0x430] sm:$0xff] }
   0x6   :  { %4272 = vmatprep.subr.bf16.mxu0 %v4271_v6  ;;  %4282 = vmatprep.subr.bf16.mxu1 %v4271_v6  ;;  %v26_v17 = vld [vmem:[%s6166_s0 + $0x28] sm:$0xff]  ;;  %v27_v18 = vld [vmem:[%s6166_s0 + $0x30] sm:$0xff]  ;;  %v156_v19 = vld [vmem:[%s6166_s0 + $0x438] sm:$0xff] }
   0x7   :  { %4067 = vmatprep.mubr.msk.f32.mxu1 %vm289_vm0, %v151_v10  ;;  %v157_v20 = vld [vmem:[%s6166_s0 + $0x440] sm:$0xff]  ;;  %v28_v21 = vld [vmem:[%s6166_s0 + $0x38] sm:$0xff]  ;;  %v158_v23 = vld [vmem:[%s6166_s0 + $0x448] sm:$0xff] }
   0x8   :  { %v29_v22 = vld [vmem:[%s6166_s0 + $0x40] sm:$0xff]  ;;  %v159_v24 = vld [vmem:[%s6166_s0 + $0x450] sm:$0xff]  ;;  %v30_v25 = vld [vmem:[%s6166_s0 + $0x48] sm:$0xff] }
   0x9   :  { %4274 = vmatpush3.bf16.msra.mxu0 %v4271_v6  ;;  %4285 = vmatpush3.bf16.msra.mxu1 %v4271_v6  ;;  %v31_v26 = vld [vmem:[%s6166_s0 + $0x50] sm:$0xff]  ;;  %v160_v27 = vld [vmem:[%s6166_s0 + $0x458] sm:$0xff]  ;;  %v161_v28 = vld [vmem:[%s6166_s0 + $0x460] sm:$0xff] }
   0xa   :  { %3870 = vmatprep.subr.msk.mxu0 %vm1058_vm1, %v281_v7  ;;  %4283 = vmatprep.subr.msk.mxu1 %vm1058_vm1, %v281_v7  ;;  %v32_v29 = vld [vmem:[%s6166_s0 + $0x58] sm:$0xff]  ;;  %v33_v30 = vld [vmem:[%s6166_s0 + $0x60] sm:$0xff]  ;;  %v162_v31 = vld [vmem:[%s6166_s0 + $0x468] sm:$0xff] }
   0xb   :  { %v163_v32 = vld [vmem:[%s6166_s0 + $0x470] sm:$0xff]  ;;  %v34_v33 = vld [vmem:[%s6166_s0 + $0x68] sm:$0xff]  ;;  %v164_v35 = vld [vmem:[%s6166_s0 + $0x478] sm:$0xff] }
   0xc   :  { %v35_v34 = vld [vmem:[%s6166_s0 + $0x70] sm:$0xff]  ;;  %v165_v36 = vld [vmem:[%s6166_s0 + $0x480] sm:$0xff]  ;;  %v36_v37 = vld [vmem:[%s6166_s0 + $0x78] sm:$0xff] }
   0xd   :  { %3871 = vmatpush3.msk.msra.mxu0 %vm1058_vm1, %v281_v7  ;;  %4286 = vmatpush3.msk.msra.mxu1 %vm1058_vm1, %v281_v7  ;;  %v37_v38 = vld [vmem:[%s6166_s0 + $0x80] sm:$0xff]  ;;  %v166_v39 = vld [vmem:[%s6166_s0 + $0x488] sm:$0xff]  ;;  %v167_v40 = vld [vmem:[%s6166_s0 + $0x490] sm:$0xff] }
   0xe   :  { %3873 = vmatmul.mubr.msk.f32.vlgmr.msra.gmra.mrb[0].mxu0 %vm289_vm0, %v22_v8  ;;  %4068 = vmatmul.mubr.msk.f32.vlgmr.msra.gmra.mrb[0].mxu1 %vm289_vm0, %v152_v11  ;;  %v38_v41 = vld [vmem:[%s6166_s0 + $0x88] sm:$0xff]  ;;  %v39_v42 = vld [vmem:[%s6166_s0 + $0x90] sm:$0xff]  ;;  %v168_v43 = vld [vmem:[%s6166_s0 + $0x498] sm:$0xff] }
   0xf   :  { %3875 = vmatprep.mubr.msk.f32.mxu0 %vm289_vm0, %v23_v9  ;;  %4070 = vmatprep.mubr.msk.f32.mxu1 %vm289_vm0, %v153_v12  ;;  %v169_v44 = vld [vmem:[%s6166_s0 + $0x4a0] sm:$0xff]  ;;  %v40_v45 = vld [vmem:[%s6166_s0 + $0x98] sm:$0xff]  ;;  %v170_v47 = vld [vmem:[%s6166_s0 + $0x4a8] sm:$0xff] }
  0x10   :  { %v41_v46 = vld [vmem:[%s6166_s0 + $0xa0] sm:$0xff] }
  0x12   :  { %3876 = vmatmul.mubr.msk.f32.gmra.mrb[2].mxu0 %vm289_vm0, %v24_v13  ;;  %4071 = vmatmul.mubr.msk.f32.gmra.mrb[2].mxu1 %vm289_vm0, %v154_v15 }
  0x13   :  { %3878 = vmatprep.mubr.msk.f32.mxu0 %vm289_vm0, %v25_v14  ;;  %4073 = vmatprep.mubr.msk.f32.mxu1 %vm289_vm0, %v155_v16 }
  0x16   :  { %3879 = vmatmul.mubr.msk.f32.gmra.mrb[4].mxu0 %vm289_vm0, %v26_v17  ;;  %4074 = vmatmul.mubr.msk.f32.gmra.mrb[4].mxu1 %vm289_vm0, %v156_v19 }
  0x17   :  { %3881 = vmatprep.mubr.msk.f32.mxu0 %vm289_vm0, %v27_v18  ;;  %4076 = vmatprep.mubr.msk.f32.mxu1 %vm289_vm0, %v157_v20 }
  0x1a   :  { %3882 = vmatmul.mubr.msk.f32.gmra.mrb[6].mxu0 %vm289_vm0, %v28_v21  ;;  %4077 = vmatmul.mubr.msk.f32.gmra.mrb[6].mxu1 %vm289_vm0, %v158_v23 }
  0x1b   :  { %3884 = vmatprep.mubr.msk.f32.mxu0 %vm289_vm0, %v29_v22  ;;  %4079 = vmatprep.mubr.msk.f32.mxu1 %vm289_vm0, %v159_v24 }
  0x1e   :  { %3885 = vmatmul.mubr.msk.f32.gmra.mrb[8].mxu0 %vm289_vm0, %v30_v25  ;;  %4080 = vmatmul.mubr.msk.f32.gmra.mrb[8].mxu1 %vm289_vm0, %v160_v27 }
  0x1f   :  { %3887 = vmatprep.mubr.msk.f32.mxu0 %vm289_vm0, %v31_v26  ;;  %4082 = vmatprep.mubr.msk.f32.mxu1 %vm289_vm0, %v161_v28 }
  0x22   :  { %3888 = vmatmul.mubr.msk.f32.gmra.mrb[10].mxu0 %vm289_vm0, %v32_v29  ;;  %4083 = vmatmul.mubr.msk.f32.gmra.mrb[10].mxu1 %vm289_vm0, %v162_v31 }
  0x23   :  { %3890 = vmatprep.mubr.msk.f32.mxu0 %vm289_vm0, %v33_v30  ;;  %4085 = vmatprep.mubr.msk.f32.mxu1 %vm289_vm0, %v163_v32 }
  0x26   :  { %3891 = vmatmul.mubr.msk.f32.gmra.mrb[12].mxu0 %vm289_vm0, %v34_v33  ;;  %4086 = vmatmul.mubr.msk.f32.gmra.mrb[12].mxu1 %vm289_vm0, %v164_v35 }
  0x27   :  { %3893 = vmatprep.mubr.msk.f32.mxu0 %vm289_vm0, %v35_v34  ;;  %4088 = vmatprep.mubr.msk.f32.mxu1 %vm289_vm0, %v165_v36 }
  0x2a   :  { %3894 = vmatmul.mubr.msk.f32.gmra.mrb[14].mxu0 %vm289_vm0, %v36_v37  ;;  %4089 = vmatmul.mubr.msk.f32.gmra.mrb[14].mxu1 %vm289_vm0, %v166_v39 }
  0x2b   :  { %3896 = vmatprep.mubr.msk.f32.mxu0 %vm289_vm0, %v37_v38  ;;  %4091 = vmatprep.mubr.msk.f32.mxu1 %vm289_vm0, %v167_v40 }
  0x2e   :  { %3897 = vmatmul.mubr.msk.f32.gmra.mrb[16].mxu0 %vm289_vm0, %v38_v41  ;;  %4092 = vmatmul.mubr.msk.f32.gmra.mrb[16].mxu1 %vm289_vm0, %v168_v43 }
  0x2f   :  { %3899 = vmatprep.mubr.msk.f32.mxu0 %vm289_vm0, %v39_v42  ;;  %4094 = vmatprep.mubr.msk.f32.mxu1 %vm289_vm0, %v169_v44 }
  0x30   :  { %10 = vsyncpa [#allocation3], 0  ;;  %v171_v48 = vld [vmem:[%s6166_s0 + $0x4b0] sm:$0xff]  ;;  %v42_v49 = vld [vmem:[%s6166_s0 + $0xa8] sm:$0xff]  ;;  %vm2663_vm2 = vcmask 261120   ;;  %vm3235_vm3 = vcmask 1041409  }
  0x31   :  { %v43_v50 = vld [vmem:[%s6166_s0 + $0xb0] sm:$0xff]  ;;  %v172_v51 = vld [vmem:[%s6166_s0 + $0x4b8] sm:$0xff]  ;;  %v173_v52 = vld [vmem:[%s6166_s0 + $0x4c0] sm:$0xff]  ;;  %vm3237_vm4 = vcmask 1042434   ;;  %vm4318_vm5 = vmmov 0   ;;  %vm3239_vm6 = vcmask 1043459  }
  0x32   :  { %3900 = vmatmul.mubr.msk.f32.gmra.mrb[18].mxu0 %vm289_vm0, %v40_v45  ;;  %4095 = vmatmul.mubr.msk.f32.gmra.mrb[18].mxu1 %vm289_vm0, %v170_v47  ;;  %v44_v53 = vld [vmem:[%s6166_s0 + $0xb8] sm:$0xff]  ;;  %v45_v54 = vld [vmem:[%s6166_s0 + $0xc0] sm:$0xff]  ;;  %v174_v55 = vld [vmem:[%s6166_s0 + $0x4c8] sm:$0xff]  ;;  %vm3241_vm7 = vcmask 1044484   ;;  %vm3243_vm8 = vcmask 1045509   ;;  %vm3245_vm9 = vcmask 1046534  }
  0x33   :  { %3902 = vmatprep.mubr.msk.f32.mxu0 %vm289_vm0, %v41_v46  ;;  %4097 = vmatprep.mubr.msk.f32.mxu1 %vm289_vm0, %v171_v48  ;;  %v175_v56 = vld [vmem:[%s6166_s0 + $0x4d0] sm:$0xff]  ;;  %v46_v57 = vld [vmem:[%s6166_s0 + $0xc8] sm:$0xff]  ;;  %v176_v59 = vld [vmem:[%s6166_s0 + $0x4d8] sm:$0xff]  ;;  %vm3247_vm10 = vcmask 1047559   ;;  %s4320_s8 = smov [#allocation2]  }
  0x34   :  { %v47_v58 = vld [vmem:[%s6166_s0 + $0xd0] sm:$0xff]  ;;  %v177_v60 = vld [vmem:[%s6166_s0 + $0x4e0] sm:$0xff]  ;;  %v48_v61 = vld [vmem:[%s6166_s0 + $0xd8] sm:$0xff]  ;;  %s3328_s9 = sshll.u32 %s4320_s8, 4  ;;  %s3329_s9 = int_to_ptr.vmem [resolvable:$true] %s3328_s9 }
  0x35   :  { %v49_v62 = vld [vmem:[%s6166_s0 + $0xe0] sm:$0xff]  ;;  %v178_v63 = vld [vmem:[%s6166_s0 + $0x4e8] sm:$0xff]  ;;  %v179_v0 = vld [vmem:[%s6166_s0 + $0x4f0] sm:$0xff]  ;;  %s4293_s10 = scalar_lea.vmem %s3329_s9, 128  ;;  %p4298_p1 = scmp.lt.s32.totalorder %s3329_s9, %s3329_s9 }
  0x36   :  { %3903 = vmatmul.mubr.msk.f32.gmra.mrb[20].mxu0 %vm289_vm0, %v42_v49  ;;  %4098 = vmatmul.mubr.msk.f32.gmra.mrb[20].mxu1 %vm289_vm0, %v172_v51  ;;  %v50_v1 = vld [vmem:[%s6166_s0 + $0xe8] sm:$0xff]  ;;  %v51_v2 = vld [vmem:[%s6166_s0 + $0xf0] sm:$0xff]  ;;  %v180_v3 = vld [vmem:[%s6166_s0 + $0x4f8] sm:$0xff]  ;;  %p4294_p0 = scmp.ne.s32.totalorder %s3329_s9, %s4293_s10  ;;  %p4299_p2 = scmp.lt.s32.totalorder %s4293_s10, %s4293_s10 }
  0x37   :  { %3905 = vmatprep.mubr.msk.f32.mxu0 %vm289_vm0, %v43_v50  ;;  %4100 = vmatprep.mubr.msk.f32.mxu1 %vm289_vm0, %v173_v52  ;;  %v181_v4 = vld [vmem:[%s6166_s0 + $0x500] sm:$0xff]  ;;  %v52_v5 = vld [vmem:[%s6166_s0 + $0xf8] sm:$0xff]  ;;  %v182_v7 = vld [vmem:[%s6166_s0 + $0x508] sm:$0xff] }
  0x38   :  { %v53_v6 = vld [vmem:[%s6166_s0 + $0x100] sm:$0xff]  ;;  %v183_v8 = vld [vmem:[%s6166_s0 + $0x510] sm:$0xff]  ;;  %v54_v9 = vld [vmem:[%s6166_s0 + $0x108] sm:$0xff]  ;;  %p4300_p3 = por %p4299_p2, %p4298_p1 }
  0x39   :  { %v55_v10 = vld [vmem:[%s6166_s0 + $0x110] sm:$0xff]  ;;  %v184_v11 = vld [vmem:[%s6166_s0 + $0x518] sm:$0xff]  ;;  %v185_v12 = vld [vmem:[%s6166_s0 + $0x520] sm:$0xff] }
  0x3a   :  { %3906 = vmatmul.mubr.msk.f32.gmra.mrb[22].mxu0 %vm289_vm0, %v44_v53  ;;  %4101 = vmatmul.mubr.msk.f32.gmra.mrb[22].mxu1 %vm289_vm0, %v174_v55  ;;  %v56_v13 = vld [vmem:[%s6166_s0 + $0x118] sm:$0xff]  ;;  %v57_v14 = vld [vmem:[%s6166_s0 + $0x120] sm:$0xff]  ;;  %v186_v15 = vld [vmem:[%s6166_s0 + $0x528] sm:$0xff]  ;;  %p4301_p4 = pnand %p4300_p3, %p4294_p0 }
  0x3b   :  { %3908 = vmatprep.mubr.msk.f32.mxu0 %vm289_vm0, %v45_v54  ;;  %4103 = vmatprep.mubr.msk.f32.mxu1 %vm289_vm0, %v175_v56  ;;  %v187_v16 = vld [vmem:[%s6166_s0 + $0x530] sm:$0xff]  ;;  %v58_v17 = vld [vmem:[%s6166_s0 + $0x128] sm:$0xff]  ;;  %v188_v19 = vld [vmem:[%s6166_s0 + $0x538] sm:$0xff] }
  0x3c   :  { %v59_v18 = vld [vmem:[%s6166_s0 + $0x130] sm:$0xff]  ;;  %v189_v20 = vld [vmem:[%s6166_s0 + $0x540] sm:$0xff]  ;;  %v60_v21 = vld [vmem:[%s6166_s0 + $0x138] sm:$0xff] }
  0x3d   :  { %v61_v22 = vld [vmem:[%s6166_s0 + $0x140] sm:$0xff]  ;;  %v190_v23 = vld [vmem:[%s6166_s0 + $0x548] sm:$0xff]  ;;  %v191_v24 = vld [vmem:[%s6166_s0 + $0x550] sm:$0xff] }
  0x3e   :  { %3909 = vmatmul.mubr.msk.f32.gmra.mrb[24].mxu0 %vm289_vm0, %v46_v57  ;;  %4104 = vmatmul.mubr.msk.f32.gmra.mrb[24].mxu1 %vm289_vm0, %v176_v59  ;;  %v62_v25 = vld [vmem:[%s6166_s0 + $0x148] sm:$0xff]  ;;  %v63_v26 = vld [vmem:[%s6166_s0 + $0x150] sm:$0xff]  ;;  %v192_v27 = vld [vmem:[%s6166_s0 + $0x558] sm:$0xff] }
  0x3f   :  { %3911 = vmatprep.mubr.msk.f32.mxu0 %vm289_vm0, %v47_v58  ;;  %4106 = vmatprep.mubr.msk.f32.mxu1 %vm289_vm0, %v177_v60  ;;  %v193_v28 = vld [vmem:[%s6166_s0 + $0x560] sm:$0xff]  ;;  %v64_v29 = vld [vmem:[%s6166_s0 + $0x158] sm:$0xff]  ;;  %v194_v31 = vld [vmem:[%s6166_s0 + $0x568] sm:$0xff] }
  0x40   :  { %v65_v30 = vld [vmem:[%s6166_s0 + $0x160] sm:$0xff]  ;;  %v195_v32 = vld [vmem:[%s6166_s0 + $0x570] sm:$0xff]  ;;  %v66_v33 = vld [vmem:[%s6166_s0 + $0x168] sm:$0xff] }
  0x41   :  { %v67_v34 = vld [vmem:[%s6166_s0 + $0x170] sm:$0xff]  ;;  %v196_v35 = vld [vmem:[%s6166_s0 + $0x578] sm:$0xff]  ;;  %v197_v36 = vld [vmem:[%s6166_s0 + $0x580] sm:$0xff] }
  0x42   :  { %3912 = vmatmul.mubr.msk.f32.gmra.mrb[26].mxu0 %vm289_vm0, %v48_v61  ;;  %4107 = vmatmul.mubr.msk.f32.gmra.mrb[26].mxu1 %vm289_vm0, %v178_v63  ;;  %v68_v37 = vld [vmem:[%s6166_s0 + $0x178] sm:$0xff]  ;;  %v69_v38 = vld [vmem:[%s6166_s0 + $0x180] sm:$0xff]  ;;  %v198_v39 = vld [vmem:[%s6166_s0 + $0x588] sm:$0xff] }
  0x43   :  { %3914 = vmatprep.mubr.msk.f32.mxu0 %vm289_vm0, %v49_v62  ;;  %4109 = vmatprep.mubr.msk.f32.mxu1 %vm289_vm0, %v179_v0  ;;  %v199_v40 = vld [vmem:[%s6166_s0 + $0x590] sm:$0xff]  ;;  %v70_v41 = vld [vmem:[%s6166_s0 + $0x188] sm:$0xff]  ;;  %v200_v43 = vld [vmem:[%s6166_s0 + $0x598] sm:$0xff] }
  0x44   :  { %v71_v42 = vld [vmem:[%s6166_s0 + $0x190] sm:$0xff]  ;;  %v201_v44 = vld [vmem:[%s6166_s0 + $0x5a0] sm:$0xff]  ;;  %v72_v45 = vld [vmem:[%s6166_s0 + $0x198] sm:$0xff] }
  0x45   :  { %v73_v46 = vld [vmem:[%s6166_s0 + $0x1a0] sm:$0xff]  ;;  %v202_v47 = vld [vmem:[%s6166_s0 + $0x5a8] sm:$0xff]  ;;  %v203_v48 = vld [vmem:[%s6166_s0 + $0x5b0] sm:$0xff] }
  0x46   :  { %3915 = vmatmul.mubr.msk.f32.gmra.mrb[28].mxu0 %vm289_vm0, %v50_v1  ;;  %4110 = vmatmul.mubr.msk.f32.gmra.mrb[28].mxu1 %vm289_vm0, %v180_v3  ;;  %v74_v49 = vld [vmem:[%s6166_s0 + $0x1a8] sm:$0xff]  ;;  %v75_v50 = vld [vmem:[%s6166_s0 + $0x1b0] sm:$0xff]  ;;  %v204_v51 = vld [vmem:[%s6166_s0 + $0x5b8] sm:$0xff] }
  0x47   :  { %3917 = vmatprep.mubr.msk.f32.mxu0 %vm289_vm0, %v51_v2  ;;  %4112 = vmatprep.mubr.msk.f32.mxu1 %vm289_vm0, %v181_v4  ;;  %v205_v52 = vld [vmem:[%s6166_s0 + $0x5c0] sm:$0xff]  ;;  %v76_v53 = vld [vmem:[%s6166_s0 + $0x1b8] sm:$0xff]  ;;  %v206_v55 = vld [vmem:[%s6166_s0 + $0x5c8] sm:$0xff] }
  0x48   :  { %v77_v54 = vld [vmem:[%s6166_s0 + $0x1c0] sm:$0xff]  ;;  %v207_v56 = vld [vmem:[%s6166_s0 + $0x5d0] sm:$0xff]  ;;  %v78_v57 = vld [vmem:[%s6166_s0 + $0x1c8] sm:$0xff] }
  0x49   :  { %v79_v58 = vld [vmem:[%s6166_s0 + $0x1d0] sm:$0xff]  ;;  %v208_v59 = vld [vmem:[%s6166_s0 + $0x5d8] sm:$0xff]  ;;  %v209_v60 = vld [vmem:[%s6166_s0 + $0x5e0] sm:$0xff] }
  0x4a   :  { %3918 = vmatmul.mubr.msk.f32.gmra.mrb[30].mxu0 %vm289_vm0, %v52_v5  ;;  %4113 = vmatmul.mubr.msk.f32.gmra.mrb[30].mxu1 %vm289_vm0, %v182_v7  ;;  %v80_v61 = vld [vmem:[%s6166_s0 + $0x1d8] sm:$0xff]  ;;  %v81_v62 = vld [vmem:[%s6166_s0 + $0x1e0] sm:$0xff]  ;;  %v210_v63 = vld [vmem:[%s6166_s0 + $0x5e8] sm:$0xff] }
  0x4b   :  { %3920 = vmatprep.mubr.msk.f32.mxu0 %vm289_vm0, %v53_v6  ;;  %4115 = vmatprep.mubr.msk.f32.mxu1 %vm289_vm0, %v183_v8  ;;  %v211_v0 = vld [vmem:[%s6166_s0 + $0x5f0] sm:$0xff]  ;;  %v82_v1 = vld [vmem:[%s6166_s0 + $0x1e8] sm:$0xff]  ;;  %v212_v3 = vld [vmem:[%s6166_s0 + $0x5f8] sm:$0xff] }
  0x4c   :  { %v83_v2 = vld [vmem:[%s6166_s0 + $0x1f0] sm:$0xff]  ;;  %v213_v4 = vld [vmem:[%s6166_s0 + $0x600] sm:$0xff]  ;;  %v84_v5 = vld [vmem:[%s6166_s0 + $0x1f8] sm:$0xff] }
  0x4d   :  { %v85_v6 = vld [vmem:[%s6166_s0 + $0x200] sm:$0xff]  ;;  %v214_v7 = vld [vmem:[%s6166_s0 + $0x608] sm:$0xff]  ;;  %v215_v8 = vld [vmem:[%s6166_s0 + $0x610] sm:$0xff] }
  0x4e   :  { %3921 = vmatmul.mubr.msk.f32.gmra.mrb[32].mxu0 %vm289_vm0, %v54_v9  ;;  %4116 = vmatmul.mubr.msk.f32.gmra.mrb[32].mxu1 %vm289_vm0, %v184_v11  ;;  %v86_v9 = vld [vmem:[%s6166_s0 + $0x208] sm:$0xff]  ;;  %v216_v11 = vld [vmem:[%s6166_s0 + $0x618] sm:$0xff] }
  0x4f   :  { %3923 = vmatprep.mubr.msk.f32.mxu0 %vm289_vm0, %v55_v10  ;;  %4118 = vmatprep.mubr.msk.f32.mxu1 %vm289_vm0, %v185_v12  ;;  %v87_v10 = vld [vmem:[%s6166_s0 + $0x210] sm:$0xff]  ;;  %v217_v12 = vld [vmem:[%s6166_s0 + $0x620] sm:$0xff] }
  0x52   :  { %3924 = vmatmul.mubr.msk.f32.gmra.mrb[34].mxu0 %vm289_vm0, %v56_v13  ;;  %4119 = vmatmul.mubr.msk.f32.gmra.mrb[34].mxu1 %vm289_vm0, %v186_v15  ;;  %v88_v13 = vld [vmem:[%s6166_s0 + $0x218] sm:$0xff]  ;;  %v218_v15 = vld [vmem:[%s6166_s0 + $0x628] sm:$0xff] }
  0x53   :  { %3926 = vmatprep.mubr.msk.f32.mxu0 %vm289_vm0, %v57_v14  ;;  %4121 = vmatprep.mubr.msk.f32.mxu1 %vm289_vm0, %v187_v16  ;;  %v89_v14 = vld [vmem:[%s6166_s0 + $0x220] sm:$0xff]  ;;  %v219_v16 = vld [vmem:[%s6166_s0 + $0x630] sm:$0xff] }
  0x56   :  { %3927 = vmatmul.mubr.msk.f32.gmra.mrb[36].mxu0 %vm289_vm0, %v58_v17  ;;  %4122 = vmatmul.mubr.msk.f32.gmra.mrb[36].mxu1 %vm289_vm0, %v188_v19  ;;  %v90_v17 = vld [vmem:[%s6166_s0 + $0x228] sm:$0xff]  ;;  %v220_v19 = vld [vmem:[%s6166_s0 + $0x638] sm:$0xff] }
  0x57   :  { %3929 = vmatprep.mubr.msk.f32.mxu0 %vm289_vm0, %v59_v18  ;;  %4124 = vmatprep.mubr.msk.f32.mxu1 %vm289_vm0, %v189_v20  ;;  %v91_v18 = vld [vmem:[%s6166_s0 + $0x230] sm:$0xff]  ;;  %v221_v20 = vld [vmem:[%s6166_s0 + $0x640] sm:$0xff] }
  0x5a   :  { %3930 = vmatmul.mubr.msk.f32.gmra.mrb[38].mxu0 %vm289_vm0, %v60_v21  ;;  %4125 = vmatmul.mubr.msk.f32.gmra.mrb[38].mxu1 %vm289_vm0, %v190_v23  ;;  %v92_v21 = vld [vmem:[%s6166_s0 + $0x238] sm:$0xff]  ;;  %v222_v23 = vld [vmem:[%s6166_s0 + $0x648] sm:$0xff] }
  0x5b   :  { %3932 = vmatprep.mubr.msk.f32.mxu0 %vm289_vm0, %v61_v22  ;;  %4127 = vmatprep.mubr.msk.f32.mxu1 %vm289_vm0, %v191_v24  ;;  %v93_v22 = vld [vmem:[%s6166_s0 + $0x240] sm:$0xff]  ;;  %v223_v24 = vld [vmem:[%s6166_s0 + $0x650] sm:$0xff] }
  0x5e   :  { %3933 = vmatmul.mubr.msk.f32.gmra.mrb[40].mxu0 %vm289_vm0, %v62_v25  ;;  %4128 = vmatmul.mubr.msk.f32.gmra.mrb[40].mxu1 %vm289_vm0, %v192_v27  ;;  %v94_v25 = vld [vmem:[%s6166_s0 + $0x248] sm:$0xff]  ;;  %v224_v27 = vld [vmem:[%s6166_s0 + $0x658] sm:$0xff] }
  0x5f   :  { %3935 = vmatprep.mubr.msk.f32.mxu0 %vm289_vm0, %v63_v26  ;;  %4130 = vmatprep.mubr.msk.f32.mxu1 %vm289_vm0, %v193_v28  ;;  %v95_v26 = vld [vmem:[%s6166_s0 + $0x250] sm:$0xff]  ;;  %v225_v28 = vld [vmem:[%s6166_s0 + $0x660] sm:$0xff] }
  0x62   :  { %3936 = vmatmul.mubr.msk.f32.gmra.mrb[42].mxu0 %vm289_vm0, %v64_v29  ;;  %4131 = vmatmul.mubr.msk.f32.gmra.mrb[42].mxu1 %vm289_vm0, %v194_v31  ;;  %v96_v29 = vld [vmem:[%s6166_s0 + $0x258] sm:$0xff]  ;;  %v226_v31 = vld [vmem:[%s6166_s0 + $0x668] sm:$0xff] }
  0x63   :  { %3938 = vmatprep.mubr.msk.f32.mxu0 %vm289_vm0, %v65_v30  ;;  %4133 = vmatprep.mubr.msk.f32.mxu1 %vm289_vm0, %v195_v32  ;;  %v97_v30 = vld [vmem:[%s6166_s0 + $0x260] sm:$0xff]  ;;  %v227_v32 = vld [vmem:[%s6166_s0 + $0x670] sm:$0xff] }
  0x66   :  { %3939 = vmatmul.mubr.msk.f32.gmra.mrb[44].mxu0 %vm289_vm0, %v66_v33  ;;  %4134 = vmatmul.mubr.msk.f32.gmra.mrb[44].mxu1 %vm289_vm0, %v196_v35  ;;  %v98_v33 = vld [vmem:[%s6166_s0 + $0x268] sm:$0xff]  ;;  %v228_v35 = vld [vmem:[%s6166_s0 + $0x678] sm:$0xff] }
  0x67   :  { %3941 = vmatprep.mubr.msk.f32.mxu0 %vm289_vm0, %v67_v34  ;;  %4136 = vmatprep.mubr.msk.f32.mxu1 %vm289_vm0, %v197_v36  ;;  %v99_v34 = vld [vmem:[%s6166_s0 + $0x270] sm:$0xff]  ;;  %v229_v36 = vld [vmem:[%s6166_s0 + $0x680] sm:$0xff] }
  0x6a   :  { %3942 = vmatmul.mubr.msk.f32.gmra.mrb[46].mxu0 %vm289_vm0, %v68_v37  ;;  %4137 = vmatmul.mubr.msk.f32.gmra.mrb[46].mxu1 %vm289_vm0, %v198_v39  ;;  %v100_v37 = vld [vmem:[%s6166_s0 + $0x278] sm:$0xff]  ;;  %v230_v39 = vld [vmem:[%s6166_s0 + $0x688] sm:$0xff] }
  0x6b   :  { %3944 = vmatprep.mubr.msk.f32.mxu0 %vm289_vm0, %v69_v38  ;;  %4139 = vmatprep.mubr.msk.f32.mxu1 %vm289_vm0, %v199_v40  ;;  %v101_v38 = vld [vmem:[%s6166_s0 + $0x280] sm:$0xff]  ;;  %v231_v40 = vld [vmem:[%s6166_s0 + $0x690] sm:$0xff] }
  0x6e   :  { %3945 = vmatmul.mubr.msk.f32.gmra.mrb[48].mxu0 %vm289_vm0, %v70_v41  ;;  %4140 = vmatmul.mubr.msk.f32.gmra.mrb[48].mxu1 %vm289_vm0, %v200_v43  ;;  %v102_v41 = vld [vmem:[%s6166_s0 + $0x288] sm:$0xff]  ;;  %v232_v43 = vld [vmem:[%s6166_s0 + $0x698] sm:$0xff] }
  0x6f   :  { %3947 = vmatprep.mubr.msk.f32.mxu0 %vm289_vm0, %v71_v42  ;;  %4142 = vmatprep.mubr.msk.f32.mxu1 %vm289_vm0, %v201_v44  ;;  %v103_v42 = vld [vmem:[%s6166_s0 + $0x290] sm:$0xff]  ;;  %v233_v44 = vld [vmem:[%s6166_s0 + $0x6a0] sm:$0xff] }
  0x72   :  { %3948 = vmatmul.mubr.msk.f32.gmra.mrb[50].mxu0 %vm289_vm0, %v72_v45  ;;  %4143 = vmatmul.mubr.msk.f32.gmra.mrb[50].mxu1 %vm289_vm0, %v202_v47  ;;  %v104_v45 = vld [vmem:[%s6166_s0 + $0x298] sm:$0xff]  ;;  %v234_v47 = vld [vmem:[%s6166_s0 + $0x6a8] sm:$0xff] }
  0x73   :  { %3950 = vmatprep.mubr.msk.f32.mxu0 %vm289_vm0, %v73_v46  ;;  %4145 = vmatprep.mubr.msk.f32.mxu1 %vm289_vm0, %v203_v48  ;;  %v105_v46 = vld [vmem:[%s6166_s0 + $0x2a0] sm:$0xff]  ;;  %v235_v48 = vld [vmem:[%s6166_s0 + $0x6b0] sm:$0xff] }
  0x76   :  { %3951 = vmatmul.mubr.msk.f32.gmra.mrb[52].mxu0 %vm289_vm0, %v74_v49  ;;  %4146 = vmatmul.mubr.msk.f32.gmra.mrb[52].mxu1 %vm289_vm0, %v204_v51  ;;  %v106_v49 = vld [vmem:[%s6166_s0 + $0x2a8] sm:$0xff]  ;;  %v236_v51 = vld [vmem:[%s6166_s0 + $0x6b8] sm:$0xff] }
  0x77   :  { %3953 = vmatprep.mubr.msk.f32.mxu0 %vm289_vm0, %v75_v50  ;;  %4148 = vmatprep.mubr.msk.f32.mxu1 %vm289_vm0, %v205_v52  ;;  %v107_v50 = vld [vmem:[%s6166_s0 + $0x2b0] sm:$0xff]  ;;  %v237_v52 = vld [vmem:[%s6166_s0 + $0x6c0] sm:$0xff] }
  0x7a   :  { %3954 = vmatmul.mubr.msk.f32.gmra.mrb[54].mxu0 %vm289_vm0, %v76_v53  ;;  %4149 = vmatmul.mubr.msk.f32.gmra.mrb[54].mxu1 %vm289_vm0, %v206_v55  ;;  %v108_v53 = vld [vmem:[%s6166_s0 + $0x2b8] sm:$0xff]  ;;  %v238_v55 = vld [vmem:[%s6166_s0 + $0x6c8] sm:$0xff] }
  0x7b   :  { %3956 = vmatprep.mubr.msk.f32.mxu0 %vm289_vm0, %v77_v54  ;;  %4151 = vmatprep.mubr.msk.f32.mxu1 %vm289_vm0, %v207_v56  ;;  %v109_v54 = vld [vmem:[%s6166_s0 + $0x2c0] sm:$0xff]  ;;  %v239_v56 = vld [vmem:[%s6166_s0 + $0x6d0] sm:$0xff] }
  0x7e   :  { %3957 = vmatmul.mubr.msk.f32.gmra.mrb[56].mxu0 %vm289_vm0, %v78_v57  ;;  %4152 = vmatmul.mubr.msk.f32.gmra.mrb[56].mxu1 %vm289_vm0, %v208_v59  ;;  %v110_v57 = vld [vmem:[%s6166_s0 + $0x2c8] sm:$0xff]  ;;  %v240_v59 = vld [vmem:[%s6166_s0 + $0x6d8] sm:$0xff] }
  0x7f   :  { %3959 = vmatprep.mubr.msk.f32.mxu0 %vm289_vm0, %v79_v58  ;;  %4154 = vmatprep.mubr.msk.f32.mxu1 %vm289_vm0, %v209_v60  ;;  %v111_v58 = vld [vmem:[%s6166_s0 + $0x2d0] sm:$0xff]  ;;  %v241_v60 = vld [vmem:[%s6166_s0 + $0x6e0] sm:$0xff] }
  0x82   :  { %3960 = vmatmul.mubr.msk.f32.gmra.mrb[58].mxu0 %vm289_vm0, %v80_v61  ;;  %4155 = vmatmul.mubr.msk.f32.gmra.mrb[58].mxu1 %vm289_vm0, %v210_v63  ;;  %v112_v61 = vld [vmem:[%s6166_s0 + $0x2d8] sm:$0xff]  ;;  %v242_v63 = vld [vmem:[%s6166_s0 + $0x6e8] sm:$0xff] }
  0x83   :  { %3962 = vmatprep.mubr.msk.f32.mxu0 %vm289_vm0, %v81_v62  ;;  %4157 = vmatprep.mubr.msk.f32.mxu1 %vm289_vm0, %v211_v0  ;;  %v113_v62 = vld [vmem:[%s6166_s0 + $0x2e0] sm:$0xff]  ;;  %v4317_v0 = vmov 0.0|0.0  }
  0x84   :  { %4275 = vmatprep.subr.bf16.mxu1 %v4317_v0 }
  0x86   :  { %3963 = vmatmul.mubr.msk.f32.gmra.mrb[60].mxu0 %vm289_vm0, %v82_v1  ;;  %4158 = vmatmul.mubr.msk.f32.gmra.mrb[60].mxu1 %vm289_vm0, %v212_v3  ;;  %v3216_v1 = vld [vmem:[%s6169_s3] sm:$0xff]  ;;  %v243_v3 = vld [vmem:[%s6166_s0 + $0x6f0] sm:$0xff] }
  0x87   :  { %3965 = vmatprep.mubr.msk.f32.mxu0 %vm289_vm0, %v83_v2  ;;  %4160 = vmatprep.mubr.msk.f32.mxu1 %vm289_vm0, %v213_v4  ;;  %v3217_v2 = vld [vmem:[%s6169_s3 + $0x8] sm:$0xff] }
  0x88   :  { %v4276_v4 = vpack.c.bf16 %v3217_v2, %v3216_v1  ;;  %v263_v1 = vld [vmem:[%s6166_s0 + $0x790] sm:$0xff] }
  0x8a   :  { %3966 = vmatmul.mubr.msk.f32.gmra.mrb[62].mxu0 %vm289_vm0, %v84_v5  ;;  %4161 = vmatmul.mubr.msk.f32.gmra.mrb[62].mxu1 %vm289_vm0, %v214_v7  ;;  %v114_v5 = vld [vmem:[%s6166_s0 + $0x2e8] sm:$0xff]  ;;  %v244_v7 = vld [vmem:[%s6166_s0 + $0x6f8] sm:$0xff] }
  0x8b   :  { %3968 = vmatprep.mubr.msk.f32.mxu0 %vm289_vm0, %v85_v6  ;;  %4163 = vmatprep.mubr.msk.f32.mxu1 %vm289_vm0, %v215_v8  ;;  %v115_v6 = vld [vmem:[%s6166_s0 + $0x2f0] sm:$0xff]  ;;  %v245_v8 = vld [vmem:[%s6166_s0 + $0x700] sm:$0xff] }
  0x8c   :  { %4277 = vmatpush3.bf16.msra.mxu1 %v4276_v4 }
  0x8d   :  { %4278 = vmatprep.subr.bf16.mxu1 %v4317_v0 }
  0x8e   :  { %3969 = vmatmul.mubr.msk.f32.gmra.mrb[64].mxu0 %vm289_vm0, %v86_v9  ;;  %4164 = vmatmul.mubr.msk.f32.gmra.mrb[64].mxu1 %vm289_vm0, %v216_v11  ;;  %v116_v9 = vld [vmem:[%s6166_s0 + $0x2f8] sm:$0xff]  ;;  %v246_v11 = vld [vmem:[%s6166_s0 + $0x708] sm:$0xff] }
  0x8f   :  { %3971 = vmatprep.mubr.msk.f32.mxu0 %vm289_vm0, %v87_v10  ;;  %4166 = vmatprep.mubr.msk.f32.mxu1 %vm289_vm0, %v217_v12  ;;  %v117_v10 = vld [vmem:[%s6166_s0 + $0x300] sm:$0xff]  ;;  %v247_v12 = vld [vmem:[%s6166_s0 + $0x710] sm:$0xff] }
  0x92   :  { %3972 = vmatmul.mubr.msk.f32.gmra.mrb[66].mxu0 %vm289_vm0, %v88_v13  ;;  %4167 = vmatmul.mubr.msk.f32.gmra.mrb[66].mxu1 %vm289_vm0, %v218_v15  ;;  %v118_v13 = vld [vmem:[%s6166_s0 + $0x308] sm:$0xff]  ;;  %v248_v15 = vld [vmem:[%s6166_s0 + $0x718] sm:$0xff] }
  0x93   :  { %3974 = vmatprep.mubr.msk.f32.mxu0 %vm289_vm0, %v89_v14  ;;  %4169 = vmatprep.mubr.msk.f32.mxu1 %vm289_vm0, %v219_v16  ;;  %v119_v14 = vld [vmem:[%s6166_s0 + $0x310] sm:$0xff]  ;;  %v249_v16 = vld [vmem:[%s6166_s0 + $0x720] sm:$0xff] }
  0x96   :  { %3975 = vmatmul.mubr.msk.f32.gmra.mrb[68].mxu0 %vm289_vm0, %v90_v17  ;;  %4170 = vmatmul.mubr.msk.f32.gmra.mrb[68].mxu1 %vm289_vm0, %v220_v19  ;;  %v120_v17 = vld [vmem:[%s6166_s0 + $0x318] sm:$0xff]  ;;  %v250_v19 = vld [vmem:[%s6166_s0 + $0x728] sm:$0xff] }
  0x97   :  { %3977 = vmatprep.mubr.msk.f32.mxu0 %vm289_vm0, %v91_v18  ;;  %4172 = vmatprep.mubr.msk.f32.mxu1 %vm289_vm0, %v221_v20  ;;  %v121_v18 = vld [vmem:[%s6166_s0 + $0x320] sm:$0xff]  ;;  %v251_v20 = vld [vmem:[%s6166_s0 + $0x730] sm:$0xff] }
  0x9a   :  { %3978 = vmatmul.mubr.msk.f32.gmra.mrb[70].mxu0 %vm289_vm0, %v92_v21  ;;  %4173 = vmatmul.mubr.msk.f32.gmra.mrb[70].mxu1 %vm289_vm0, %v222_v23  ;;  %v122_v21 = vld [vmem:[%s6166_s0 + $0x328] sm:$0xff]  ;;  %v252_v23 = vld [vmem:[%s6166_s0 + $0x738] sm:$0xff] }
  0x9b   :  { %3980 = vmatprep.mubr.msk.f32.mxu0 %vm289_vm0, %v93_v22  ;;  %4175 = vmatprep.mubr.msk.f32.mxu1 %vm289_vm0, %v223_v24  ;;  %v123_v22 = vld [vmem:[%s6166_s0 + $0x330] sm:$0xff]  ;;  %v253_v24 = vld [vmem:[%s6166_s0 + $0x740] sm:$0xff] }
  0x9e   :  { %3981 = vmatmul.mubr.msk.f32.gmra.mrb[72].mxu0 %vm289_vm0, %v94_v25  ;;  %4176 = vmatmul.mubr.msk.f32.gmra.mrb[72].mxu1 %vm289_vm0, %v224_v27  ;;  %v124_v25 = vld [vmem:[%s6166_s0 + $0x338] sm:$0xff]  ;;  %v254_v27 = vld [vmem:[%s6166_s0 + $0x748] sm:$0xff] }
  0x9f   :  { %3983 = vmatprep.mubr.msk.f32.mxu0 %vm289_vm0, %v95_v26  ;;  %4178 = vmatprep.mubr.msk.f32.mxu1 %vm289_vm0, %v225_v28  ;;  %v125_v26 = vld [vmem:[%s6166_s0 + $0x340] sm:$0xff]  ;;  %v255_v28 = vld [vmem:[%s6166_s0 + $0x750] sm:$0xff] }
  0xa2   :  { %3984 = vmatmul.mubr.msk.f32.gmra.mrb[74].mxu0 %vm289_vm0, %v96_v29  ;;  %4179 = vmatmul.mubr.msk.f32.gmra.mrb[74].mxu1 %vm289_vm0, %v226_v31  ;;  %v126_v29 = vld [vmem:[%s6166_s0 + $0x348] sm:$0xff]  ;;  %v256_v31 = vld [vmem:[%s6166_s0 + $0x758] sm:$0xff] }
  0xa3   :  { %3986 = vmatprep.mubr.msk.f32.mxu0 %vm289_vm0, %v97_v30  ;;  %4181 = vmatprep.mubr.msk.f32.mxu1 %vm289_vm0, %v227_v32  ;;  %v127_v30 = vld [vmem:[%s6166_s0 + $0x350] sm:$0xff]  ;;  %v257_v32 = vld [vmem:[%s6166_s0 + $0x760] sm:$0xff] }
  0xa6   :  { %3987 = vmatmul.mubr.msk.f32.gmra.mrb[76].mxu0 %vm289_vm0, %v98_v33  ;;  %4182 = vmatmul.mubr.msk.f32.gmra.mrb[76].mxu1 %vm289_vm0, %v228_v35  ;;  %v5228_v33 = vld [vmem:[%s6168_s2] ss:$0 sm:$0xff] }
  0xa7   :  { %3989 = vmatprep.mubr.msk.f32.mxu0 %vm289_vm0, %v99_v34  ;;  %4184 = vmatprep.mubr.msk.f32.mxu1 %vm289_vm0, %v229_v36  ;;  %v128_v34 = vld [vmem:[%s6166_s0 + $0x358] sm:$0xff]  ;;  %v129_v35 = vld [vmem:[%s6166_s0 + $0x360] sm:$0xff]  ;;  %v258_v36 = vld [vmem:[%s6166_s0 + $0x768] sm:$0xff] }
  0xaa   :  { %3990 = vmatmul.mubr.msk.f32.gmra.mrb[78].mxu0 %vm289_vm0, %v100_v37  ;;  %4185 = vmatmul.mubr.msk.f32.gmra.mrb[78].mxu1 %vm289_vm0, %v230_v39 }
  0xab   :  { %3992 = vmatprep.mubr.msk.f32.mxu0 %vm289_vm0, %v101_v38  ;;  %4187 = vmatprep.mubr.msk.f32.mxu1 %vm289_vm0, %v231_v40  ;;  %v259_v38 = vld [vmem:[%s6166_s0 + $0x770] sm:$0xff] }
  0xae   :  { %3993 = vmatmul.mubr.msk.f32.gmra.mrb[80].mxu0 %vm289_vm0, %v102_v41  ;;  %4188 = vmatmul.mubr.msk.f32.gmra.mrb[80].mxu1 %vm289_vm0, %v232_v43  ;;  %v130_v43 = vld [vmem:[%s6166_s0 + $0x368] sm:$0xff] }
  0xaf   :  { %3995 = vmatprep.mubr.msk.f32.mxu0 %vm289_vm0, %v103_v42  ;;  %4190 = vmatprep.mubr.msk.f32.mxu1 %vm289_vm0, %v233_v44 }
  0xb2   :  { %3996 = vmatmul.mubr.msk.f32.gmra.mrb[82].mxu0 %vm289_vm0, %v104_v45  ;;  %4191 = vmatmul.mubr.msk.f32.gmra.mrb[82].mxu1 %vm289_vm0, %v234_v47  ;;  %v260_v47 = vld [vmem:[%s6166_s0 + $0x778] sm:$0xff] }
  0xb3   :  { %3998 = vmatprep.mubr.msk.f32.mxu0 %vm289_vm0, %v105_v46  ;;  %4193 = vmatprep.mubr.msk.f32.mxu1 %vm289_vm0, %v235_v48  ;;  %v131_v46 = vld [vmem:[%s6166_s0 + $0x370] sm:$0xff] }
  0xb6   :  { %3999 = vmatmul.mubr.msk.f32.gmra.mrb[84].mxu0 %vm289_vm0, %v106_v49  ;;  %4194 = vmatmul.mubr.msk.f32.gmra.mrb[84].mxu1 %vm289_vm0, %v236_v51 }
  0xb7   :  { %4001 = vmatprep.mubr.msk.f32.mxu0 %vm289_vm0, %v107_v50  ;;  %4196 = vmatprep.mubr.msk.f32.mxu1 %vm289_vm0, %v237_v52  ;;  %v261_v50 = vld [vmem:[%s6166_s0 + $0x780] sm:$0xff] }
  0xba   :  { %4002 = vmatmul.mubr.msk.f32.gmra.mrb[86].mxu0 %vm289_vm0, %v108_v53  ;;  %4197 = vmatmul.mubr.msk.f32.gmra.mrb[86].mxu1 %vm289_vm0, %v238_v55 }
  0xbb   :  { %4004 = vmatprep.mubr.msk.f32.mxu0 %vm289_vm0, %v109_v54  ;;  %4199 = vmatprep.mubr.msk.f32.mxu1 %vm289_vm0, %v239_v56 }
  0xbe   :  { %4005 = vmatmul.mubr.msk.f32.gmra.mrb[88].mxu0 %vm289_vm0, %v110_v57  ;;  %4200 = vmatmul.mubr.msk.f32.gmra.mrb[88].mxu1 %vm289_vm0, %v240_v59  ;;  %v132_v57 = vld [vmem:[%s6166_s0 + $0x378] sm:$0xff] }
  0xbf   :  { %4007 = vmatprep.mubr.msk.f32.mxu0 %vm289_vm0, %v111_v58  ;;  %4202 = vmatprep.mubr.msk.f32.mxu1 %vm289_vm0, %v241_v60  ;;  %v133_v60 = vld [vmem:[%s6166_s0 + $0x380] sm:$0xff] }
  0xc2   :  { %4008 = vmatmul.mubr.msk.f32.gmra.mrb[90].mxu0 %vm289_vm0, %v112_v61  ;;  %4203 = vmatmul.mubr.msk.f32.gmra.mrb[90].mxu1 %vm289_vm0, %v242_v63  ;;  %v262_v61 = vld [vmem:[%s6166_s0 + $0x788] sm:$0xff] }
  0xc3   :  { %4010 = vmatprep.mubr.msk.f32.mxu0 %vm289_vm0, %v113_v62  ;;  %4205 = vmatprep.mubr.msk.f32.mxu1 %vm289_vm0, %v243_v3 }
  0xc6   :  { %4011 = vmatmul.mubr.msk.f32.gmra.mrb[92].mxu0 %vm289_vm0, %v114_v5  ;;  %4206 = vmatmul.mubr.msk.f32.gmra.mrb[92].mxu1 %vm289_vm0, %v244_v7  ;;  %v134_v7 = vld [vmem:[%s6166_s0 + $0x388] sm:$0xff] }
  0xc7   :  { %4013 = vmatprep.mubr.msk.f32.mxu0 %vm289_vm0, %v115_v6  ;;  %4208 = vmatprep.mubr.msk.f32.mxu1 %vm289_vm0, %v245_v8 }
  0xca   :  { %4014 = vmatmul.mubr.msk.f32.gmra.mrb[94].mxu0 %vm289_vm0, %v116_v9  ;;  %4209 = vmatmul.mubr.msk.f32.gmra.mrb[94].mxu1 %vm289_vm0, %v246_v11  ;;  %v264_v11 = vld [vmem:[%s6166_s0 + $0x798] sm:$0xff] }
  0xcb   :  { %4016 = vmatprep.mubr.msk.f32.mxu0 %vm289_vm0, %v117_v10  ;;  %4211 = vmatprep.mubr.msk.f32.mxu1 %vm289_vm0, %v247_v12  ;;  %v135_v10 = vld [vmem:[%s6166_s0 + $0x390] sm:$0xff] }
  0xce   :  { %4017 = vmatmul.mubr.msk.f32.gmra.mrb[96].mxu0 %vm289_vm0, %v118_v13  ;;  %4212 = vmatmul.mubr.msk.f32.gmra.mrb[96].mxu1 %vm289_vm0, %v248_v15 }
  0xcf   :  { %4019 = vmatprep.mubr.msk.f32.mxu0 %vm289_vm0, %v119_v14  ;;  %4214 = vmatprep.mubr.msk.f32.mxu1 %vm289_vm0, %v249_v16  ;;  %v265_v16 = vld [vmem:[%s6166_s0 + $0x7a0] sm:$0xff] }
  0xd2   :  { %4020 = vmatmul.mubr.msk.f32.gmra.mrb[98].mxu0 %vm289_vm0, %v120_v17  ;;  %4215 = vmatmul.mubr.msk.f32.gmra.mrb[98].mxu1 %vm289_vm0, %v250_v19 }
  0xd3   :  { %4022 = vmatprep.mubr.msk.f32.mxu0 %vm289_vm0, %v121_v18  ;;  %4217 = vmatprep.mubr.msk.f32.mxu1 %vm289_vm0, %v251_v20 }
  0xd6   :  { %4023 = vmatmul.mubr.msk.f32.gmra.mrb[100].mxu0 %vm289_vm0, %v122_v21  ;;  %4218 = vmatmul.mubr.msk.f32.gmra.mrb[100].mxu1 %vm289_vm0, %v252_v23  ;;  %v136_v23 = vld [vmem:[%s6166_s0 + $0x398] sm:$0xff] }
  0xd7   :  { %4025 = vmatprep.mubr.msk.f32.mxu0 %vm289_vm0, %v123_v22  ;;  %4220 = vmatprep.mubr.msk.f32.mxu1 %vm289_vm0, %v253_v24 }
  0xda   :  { %4026 = vmatmul.mubr.msk.f32.gmra.mrb[102].mxu0 %vm289_vm0, %v124_v25  ;;  %4221 = vmatmul.mubr.msk.f32.gmra.mrb[102].mxu1 %vm289_vm0, %v254_v27  ;;  %v266_v27 = vld [vmem:[%s6166_s0 + $0x7a8] sm:$0xff] }
  0xdb   :  { %4028 = vmatprep.mubr.msk.f32.mxu0 %vm289_vm0, %v125_v26  ;;  %4223 = vmatprep.mubr.msk.f32.mxu1 %vm289_vm0, %v255_v28  ;;  %v137_v26 = vld [vmem:[%s6166_s0 + $0x3a0] sm:$0xff] }
  0xde   :  { %4029 = vmatmul.mubr.msk.f32.gmra.mrb[104].mxu0 %vm289_vm0, %v126_v29  ;;  %4224 = vmatmul.mubr.msk.f32.gmra.mrb[104].mxu1 %vm289_vm0, %v256_v31 }
  0xdf   :  { %4031 = vmatprep.mubr.msk.f32.mxu0 %vm289_vm0, %v127_v30  ;;  %4226 = vmatprep.mubr.msk.f32.mxu1 %vm289_vm0, %v257_v32  ;;  %v267_v32 = vld [vmem:[%s6166_s0 + $0x7b0] sm:$0xff] }
  0xe1   :  { %v3874_v37 = vpop.f32.mrb[0].mxu0  ;;  %v5247_v41 = vpop.f32.mrb[0].mxu1 }
  0xe2   :  { %v1134_v39 = vadd.f32 %v3874_v37, %v5228_v33  ;;  %v1128_v40 = vpop.f32.mrb[1].mxu0  ;;  %4032 = vmatmul.mubr.msk.f32.gmra.mrb[106].mxu0 %vm289_vm0, %v128_v34  ;;  %4227 = vmatmul.mubr.msk.f32.gmra.mrb[106].mxu1 %vm289_vm0, %v258_v36  ;;  %v5255_v44 = vpop.f32.mrb[1].mxu1 }
  0xe3   :  { %v1129_v42 = vadd.f32 %v5228_v33, %v1128_v40  ;;  %4034 = vmatprep.mubr.msk.f32.mxu0 %vm289_vm0, %v129_v35  ;;  %4229 = vmatprep.mubr.msk.f32.mxu1 %vm289_vm0, %v259_v38  ;;  %v138_v40 = vld [vmem:[%s6166_s0 + $0x3a8] sm:$0xff] }
  0xe4   :  { %v2408_v45 = vmax.f32 %v1134_v39, 0.0 }
  0xe5   :  { %v2407_v48 = vmax.f32 %v1129_v42, 0.0  ;;  %v3877_v49 = vpop.f32.mrb[2].mxu0  ;;  %v5270_v54 = vpop.f32.mrb[2].mxu1 }
  0xe6   :  { %v2665_v51 = vsel %vm2663_vm2, %v2408_v45, 0.0  ;;  %v1144_v52 = vadd.f32 %v3877_v49, %v5228_v33  ;;  %v1138_v53 = vpop.f32.mrb[3].mxu0  ;;  %4035 = vmatmul.mubr.msk.f32.gmra.mrb[108].mxu0 %vm289_vm0, %v130_v43  ;;  %4230 = vmatmul.mubr.msk.f32.gmra.mrb[108].mxu1 %vm289_vm0, %v260_v47  ;;  %v5279_v58 = vpop.f32.mrb[3].mxu1  ;;  %v139_v45 = vld [vmem:[%s6166_s0 + $0x3b0] sm:$0xff] }
  0xe7   :  { %v2664_v55 = vsel %vm2663_vm2, %v2407_v48, 0.0  ;;  %v1139_v56 = vadd.f32 %v5228_v33, %v1138_v53  ;;  %4037 = vmatprep.mubr.msk.f32.mxu0 %vm289_vm0, %v131_v46  ;;  %4232 = vmatprep.mubr.msk.f32.mxu1 %vm289_vm0, %v261_v50  ;;  %v268_v46 = vld [vmem:[%s6166_s0 + $0x7b8] sm:$0xff] }
  0xe8   :  { %v2666_v59 = vadd.f32 %v2665_v51, %v2664_v55  ;;  %v2410_v62 = vmax.f32 %v1144_v52, 0.0  ;;  %v269_v51 = vld [vmem:[%s6166_s0 + $0x7c0] sm:$0xff] }
  0xe9   :  { %v2409_v63 = vmax.f32 %v1139_v56, 0.0  ;;  %v3880_v0 = vpop.f32.mrb[4].mxu0  ;;  %v5293_v4 = vpop.f32.mrb[4].mxu1 }
  0xea   :  { %v1154_v2 = vadd.f32 %v3880_v0, %v5228_v33  ;;  %v1148_v3 = vpop.f32.mrb[5].mxu0  ;;  %4038 = vmatmul.mubr.msk.f32.gmra.mrb[110].mxu0 %vm289_vm0, %v132_v57  ;;  %4233 = vmatmul.mubr.msk.f32.gmra.mrb[110].mxu1 %vm289_vm0, %v262_v61  ;;  %v5302_v8 = vpop.f32.mrb[5].mxu1  ;;  %v2669_v12 = vsel %vm2663_vm2, %v2410_v62, 0.0  ;;  %v270_v0 = vld [vmem:[%s6166_s0 + $0x7c8] sm:$0xff] }
  0xeb   :  { %v2667_v5 = vsel %vm2663_vm2, %v2409_v63, 0.0  ;;  %v1149_v6 = vadd.f32 %v5228_v33, %v1148_v3  ;;  %4040 = vmatprep.mubr.msk.f32.mxu0 %vm289_vm0, %v133_v60  ;;  %4235 = vmatprep.mubr.msk.f32.mxu1 %vm289_vm0, %v263_v1  ;;  %v140_v60 = vld [vmem:[%s6166_s0 + $0x3b8] sm:$0xff]  ;;  %v141_v63 = vld [vmem:[%s6166_s0 + $0x3c0] sm:$0xff] }
  0xec   :  { %v2668_v9 = vadd.f32 %v2667_v5, %v2666_v59  ;;  %v2412_v13 = vmax.f32 %v1154_v2, 0.0 }
  0xed   :  { %v2411_v14 = vmax.f32 %v1149_v6, 0.0  ;;  %v3883_v15 = vpop.f32.mrb[6].mxu0  ;;  %v5317_v20 = vpop.f32.mrb[6].mxu1  ;;  %v271_v6 = vld [vmem:[%s6166_s0 + $0x7d0] sm:$0xff] }
  0xee   :  { %v2670_v17 = vadd.f32 %v2669_v12, %v2668_v9  ;;  %v1164_v18 = vadd.f32 %v3883_v15, %v5228_v33  ;;  %v1158_v19 = vpop.f32.mrb[7].mxu0  ;;  %4041 = vmatmul.mubr.msk.f32.gmra.mrb[112].mxu0 %vm289_vm0, %v134_v7  ;;  %4236 = vmatmul.mubr.msk.f32.gmra.mrb[112].mxu1 %vm289_vm0, %v264_v11  ;;  %v5326_v24 = vpop.f32.mrb[7].mxu1  ;;  %v2673_v28 = vsel %vm2663_vm2, %v2412_v13, 0.0 }
  0xef   :  { %v2671_v21 = vsel %vm2663_vm2, %v2411_v14, 0.0  ;;  %v1159_v22 = vadd.f32 %v5228_v33, %v1158_v19  ;;  %4043 = vmatprep.mubr.msk.f32.mxu0 %vm289_vm0, %v135_v10  ;;  %4238 = vmatprep.mubr.msk.f32.mxu1 %vm289_vm0, %v265_v16  ;;  %v142_v14 = vld [vmem:[%s6166_s0 + $0x3c8] sm:$0xff] }
  0xf0   :  { %v2672_v25 = vadd.f32 %v2671_v21, %v2670_v17  ;;  %v2414_v29 = vmax.f32 %v1164_v18, 0.0  ;;  %v143_v17 = vld [vmem:[%s6166_s0 + $0x3d0] sm:$0xff]  ;;  %v272_v18 = vld [vmem:[%s6166_s0 + $0x7d8] sm:$0xff] }
  0xf1   :  { %v2413_v30 = vmax.f32 %v1159_v22, 0.0  ;;  %v3886_v31 = vpop.f32.mrb[8].mxu0  ;;  %v5341_v37 = vpop.f32.mrb[8].mxu1 }
  0xf2   :  { %v2674_v34 = vadd.f32 %v2673_v28, %v2672_v25  ;;  %v1174_v35 = vadd.f32 %v3886_v31, %v5228_v33  ;;  %v1168_v36 = vpop.f32.mrb[9].mxu0  ;;  %4044 = vmatmul.mubr.msk.f32.gmra.mrb[114].mxu0 %vm289_vm0, %v136_v23  ;;  %4239 = vmatmul.mubr.msk.f32.gmra.mrb[114].mxu1 %vm289_vm0, %v266_v27  ;;  %v5350_v42 = vpop.f32.mrb[9].mxu1  ;;  %v2677_v47 = vsel %vm2663_vm2, %v2414_v29, 0.0  ;;  %v273_v25 = vld [vmem:[%s6166_s0 + $0x7e0] sm:$0xff] }
  0xf3   :  { %v2675_v38 = vsel %vm2663_vm2, %v2413_v30, 0.0  ;;  %v1169_v39 = vadd.f32 %v5228_v33, %v1168_v36  ;;  %4046 = vmatprep.mubr.msk.f32.mxu0 %vm289_vm0, %v137_v26  ;;  %4241 = vmatprep.mubr.msk.f32.mxu1 %vm289_vm0, %v267_v32  ;;  %v144_v32 = vld [vmem:[%s6166_s0 + $0x3d8] sm:$0xff]  ;;  %v145_v36 = vld [vmem:[%s6166_s0 + $0x3e0] sm:$0xff] }
  0xf4   :  { %v2676_v43 = vadd.f32 %v2675_v38, %v2674_v34  ;;  %v2416_v48 = vmax.f32 %v1174_v35, 0.0  ;;  %v274_v38 = vld [vmem:[%s6166_s0 + $0x7e8] sm:$0xff] }
  0xf5   :  { %v2415_v49 = vmax.f32 %v1169_v39, 0.0  ;;  %v3889_v50 = vpop.f32.mrb[10].mxu0  ;;  %v5365_v56 = vpop.f32.mrb[10].mxu1 }
  0xf6   :  { %v2678_v52 = vadd.f32 %v2677_v47, %v2676_v43  ;;  %v1184_v53 = vadd.f32 %v3889_v50, %v5228_v33  ;;  %v1178_v55 = vpop.f32.mrb[11].mxu0  ;;  %4047 = vmatmul.mubr.msk.f32.gmra.mrb[116].mxu0 %vm289_vm0, %v138_v40  ;;  %4242 = vmatmul.mubr.msk.f32.gmra.mrb[116].mxu1 %vm289_vm0, %v268_v46  ;;  %v5374_v61 = vpop.f32.mrb[11].mxu1  ;;  %v2681_v1 = vsel %vm2663_vm2, %v2416_v48, 0.0  ;;  %v275_v46 = vld [vmem:[%s6166_s0 + $0x7f0] sm:$0xff] }
  0xf7   :  { %v2679_v57 = vsel %vm2663_vm2, %v2415_v49, 0.0  ;;  %v1179_v59 = vadd.f32 %v5228_v33, %v1178_v55  ;;  %4049 = vmatprep.mubr.msk.f32.mxu0 %vm289_vm0, %v139_v45  ;;  %4244 = vmatprep.mubr.msk.f32.mxu1 %vm289_vm0, %v269_v51 }
  0xf8   :  { %v2680_v62 = vadd.f32 %v2679_v57, %v2678_v52  ;;  %v2418_v2 = vmax.f32 %v1184_v53, 0.0  ;;  %v146_v53 = vld [vmem:[%s6166_s0 + $0x3e8] sm:$0xff] }
  0xf9   :  { %v2417_v3 = vmax.f32 %v1179_v59, 0.0  ;;  %v3892_v5 = vpop.f32.mrb[12].mxu0  ;;  %v5389_v11 = vpop.f32.mrb[12].mxu1  ;;  %v147_v59 = vld [vmem:[%s6166_s0 + $0x3f0] sm:$0xff] }
  0xfa   :  { %v2682_v7 = vadd.f32 %v2681_v1, %v2680_v62  ;;  %v1194_v9 = vadd.f32 %v3892_v5, %v5228_v33  ;;  %v1188_v10 = vpop.f32.mrb[13].mxu0  ;;  %4050 = vmatmul.mubr.msk.f32.gmra.mrb[118].mxu0 %vm289_vm0, %v140_v60  ;;  %4245 = vmatmul.mubr.msk.f32.gmra.mrb[118].mxu1 %vm289_vm0, %v270_v0  ;;  %v5398_v15 = vpop.f32.mrb[13].mxu1  ;;  %v2685_v19 = vsel %vm2663_vm2, %v2418_v2, 0.0  ;;  %v276_v60 = vld [vmem:[%s6166_s0 + $0x7f8] sm:$0xff] }
  0xfb   :  { %v2683_v12 = vsel %vm2663_vm2, %v2417_v3, 0.0  ;;  %v1189_v13 = vadd.f32 %v5228_v33, %v1188_v10  ;;  %4052 = vmatprep.mubr.msk.f32.mxu0 %vm289_vm0, %v141_v63  ;;  %4247 = vmatprep.mubr.msk.f32.mxu1 %vm289_vm0, %v271_v6  ;;  %v148_v10 = vld [vmem:[%s6166_s0 + $0x3f8] sm:$0xff] }
  0xfc   :  { %v2684_v16 = vadd.f32 %v2683_v12, %v2682_v7  ;;  %v2420_v21 = vmax.f32 %v1194_v9, 0.0 }
  0xfd   :  { %v2419_v22 = vmax.f32 %v1189_v13, 0.0  ;;  %v3895_v23 = vpop.f32.mrb[14].mxu0  ;;  %v5413_v29 = vpop.f32.mrb[14].mxu1 }
  0xfe   :  { %v2686_v26 = vadd.f32 %v2685_v19, %v2684_v16  ;;  %v1204_v27 = vadd.f32 %v3895_v23, %v5228_v33  ;;  %v1198_v28 = vpop.f32.mrb[15].mxu0  ;;  %4053 = vmatmul.mubr.msk.f32.gmra.mrb[120].mxu0 %vm289_vm0, %v142_v14  ;;  %4248 = vmatmul.mubr.msk.f32.gmra.mrb[120].mxu1 %vm289_vm0, %v272_v18  ;;  %v5422_v34 = vpop.f32.mrb[15].mxu1  ;;  %v2689_v39 = vsel %vm2663_vm2, %v2420_v21, 0.0  ;;  %v149_v14 = vld [vmem:[%s6166_s0 + $0x400] sm:$0xff] }
  0xff   :  { %v2687_v30 = vsel %vm2663_vm2, %v2419_v22, 0.0  ;;  %v1199_v31 = vadd.f32 %v5228_v33, %v1198_v28  ;;  %4055 = vmatprep.mubr.msk.f32.mxu0 %vm289_vm0, %v143_v17  ;;  %4250 = vmatprep.mubr.msk.f32.mxu1 %vm289_vm0, %v273_v25  ;;  %v150_v28 = vld [vmem:[%s6166_s0 + $0x408] sm:$0xff] }
 0x100   :  { %v2688_v35 = vadd.f32 %v2687_v30, %v2686_v26  ;;  %v2422_v40 = vmax.f32 %v1204_v27, 0.0 }
 0x101   :  { %v2421_v43 = vmax.f32 %v1199_v31, 0.0  ;;  %v3898_v45 = vpop.f32.mrb[16].mxu0  ;;  %v5437_v50 = vpop.f32.mrb[16].mxu1 }
 0x102   :  { %v2690_v47 = vadd.f32 %v2689_v39, %v2688_v35  ;;  %v1214_v48 = vadd.f32 %v3898_v45, %v5228_v33  ;;  %v1208_v49 = vpop.f32.mrb[17].mxu0  ;;  %4056 = vmatmul.mubr.msk.f32.gmra.mrb[122].mxu0 %vm289_vm0, %v144_v32  ;;  %4251 = vmatmul.mubr.msk.f32.gmra.mrb[122].mxu1 %vm289_vm0, %v274_v38  ;;  %v5446_v55 = vpop.f32.mrb[17].mxu1  ;;  %v2693_v62 = vsel %vm2663_vm2, %v2422_v40, 0.0 }
 0x103   :  { %v2691_v51 = vsel %vm2663_vm2, %v2421_v43, 0.0  ;;  %v1209_v52 = vadd.f32 %v5228_v33, %v1208_v49  ;;  %4058 = vmatprep.mubr.msk.f32.mxu0 %vm289_vm0, %v145_v36  ;;  %4253 = vmatprep.mubr.msk.f32.mxu1 %vm289_vm0, %v275_v46 }
 0x104   :  { %v2692_v57 = vadd.f32 %v2691_v51, %v2690_v47  ;;  %v2424_v63 = vmax.f32 %v1214_v48, 0.0 }
 0x105   :  { %v2423_v0 = vmax.f32 %v1209_v52, 0.0  ;;  %v3901_v1 = vpop.f32.mrb[18].mxu0  ;;  %v5458_v6 = vpop.f32.mrb[18].mxu1 }
 0x106   :  { %v2694_v2 = vadd.f32 %v2693_v62, %v2692_v57  ;;  %v1224_v3 = vadd.f32 %v3901_v1, %v5228_v33  ;;  %v1218_v5 = vpop.f32.mrb[19].mxu0  ;;  %4059 = vmatmul.mubr.msk.f32.gmra.mrb[124].mxu0 %vm289_vm0, %v146_v53  ;;  %4254 = vmatmul.mubr.msk.f32.gmra.mrb[124].mxu1 %vm289_vm0, %v276_v60  ;;  %v5467_v12 = vpop.f32.mrb[19].mxu1  ;;  %v2697_v16 = vsel %vm2663_vm2, %v2424_v63, 0.0 }
 0x107   :  { %v2695_v7 = vsel %vm2663_vm2, %v2423_v0, 0.0  ;;  %v1219_v9 = vadd.f32 %v5228_v33, %v1218_v5  ;;  %4061 = vmatprep.mubr.msk.f32.mxu0 %vm289_vm0, %v147_v59 }
 0x108   :  { %v2696_v13 = vadd.f32 %v2695_v7, %v2694_v2  ;;  %v2426_v17 = vmax.f32 %v1224_v3, 0.0 }
 0x109   :  { %v2425_v18 = vmax.f32 %v1219_v9, 0.0  ;;  %v3904_v19 = vpop.f32.mrb[20].mxu0  ;;  %v5475_v25 = vpop.f32.mrb[20].mxu1 }
 0x10a   :  { %v2698_v21 = vadd.f32 %v2697_v16, %v2696_v13  ;;  %v1234_v22 = vadd.f32 %v3904_v19, %v5228_v33  ;;  %v1228_v23 = vpop.f32.mrb[21].mxu0  ;;  %4062 = vmatmul.mubr.msk.f32.gmra.mrb[126].mxu0 %vm289_vm0, %v148_v10  ;;  %v5483_v30 = vpop.f32.mrb[21].mxu1  ;;  %v2701_v32 = vsel %vm2663_vm2, %v2426_v17, 0.0 }
 0x10b   :  { %v2699_v26 = vsel %vm2663_vm2, %v2425_v18, 0.0  ;;  %v1229_v27 = vadd.f32 %v5228_v33, %v1228_v23  ;;  %4064 = vmatprep.mubr.msk.f32.mxu0 %vm289_vm0, %v149_v14 }
 0x10c   :  { %v2700_v31 = vadd.f32 %v2699_v26, %v2698_v21  ;;  %v2428_v35 = vmax.f32 %v1234_v22, 0.0 }
 0x10d   :  { %v2427_v36 = vmax.f32 %v1229_v27, 0.0  ;;  %v3907_v38 = vpop.f32.mrb[22].mxu0  ;;  %v5488_v45 = vpop.f32.mrb[22].mxu1 }
 0x10e   :  { %v2702_v39 = vadd.f32 %v2701_v32, %v2700_v31  ;;  %v1244_v40 = vadd.f32 %v3907_v38, %v5228_v33  ;;  %v1238_v43 = vpop.f32.mrb[23].mxu0  ;;  %4065 = vmatmul.mubr.msk.f32.gmra.mrb[128].mxu0 %vm289_vm0, %v150_v28  ;;  %v5492_v48 = vpop.f32.mrb[23].mxu1  ;;  %v2705_v51 = vsel %vm2663_vm2, %v2428_v35, 0.0 }
 0x10f   :  { %v2703_v46 = vsel %vm2663_vm2, %v2427_v36, 0.0  ;;  %v1239_v47 = vadd.f32 %v5228_v33, %v1238_v43 }
 0x110   :  { %v2704_v49 = vadd.f32 %v2703_v46, %v2702_v39  ;;  %v2430_v52 = vmax.f32 %v1244_v40, 0.0 }
 0x111   :  { %v2429_v53 = vmax.f32 %v1239_v47, 0.0  ;;  %v3910_v57 = vpop.f32.mrb[24].mxu0  ;;  %v5496_v63 = vpop.f32.mrb[24].mxu1 }
 0x112   :  { %v2706_v59 = vadd.f32 %v2705_v51, %v2704_v49  ;;  %v1254_v60 = vadd.f32 %v3910_v57, %v5228_v33  ;;  %v1248_v62 = vpop.f32.mrb[25].mxu0  ;;  %v5500_v2 = vpop.f32.mrb[25].mxu1  ;;  %v2709_v5 = vsel %vm2663_vm2, %v2430_v52, 0.0 }
 0x113   :  { %v2707_v0 = vsel %vm2663_vm2, %v2429_v53, 0.0  ;;  %v1249_v1 = vadd.f32 %v5228_v33, %v1248_v62 }
 0x114   :  { %v2708_v3 = vadd.f32 %v2707_v0, %v2706_v59  ;;  %v2432_v7 = vmax.f32 %v1254_v60, 0.0 }
 0x115   :  { %v2431_v9 = vmax.f32 %v1249_v1, 0.0  ;;  %v3913_v10 = vpop.f32.mrb[26].mxu0  ;;  %v5504_v17 = vpop.f32.mrb[26].mxu1 }
 0x116   :  { %v2710_v13 = vadd.f32 %v2709_v5, %v2708_v3  ;;  %v1264_v14 = vadd.f32 %v3913_v10, %v5228_v33  ;;  %v1258_v16 = vpop.f32.mrb[27].mxu0  ;;  %v5508_v21 = vpop.f32.mrb[27].mxu1  ;;  %v2713_v23 = vsel %vm2663_vm2, %v2432_v7, 0.0 }
 0x117   :  { %v2711_v18 = vsel %vm2663_vm2, %v2431_v9, 0.0  ;;  %v1259_v19 = vadd.f32 %v5228_v33, %v1258_v16 }
 0x118   :  { %v2712_v22 = vadd.f32 %v2711_v18, %v2710_v13  ;;  %v2434_v26 = vmax.f32 %v1264_v14, 0.0 }
 0x119   :  { %v2433_v27 = vmax.f32 %v1259_v19, 0.0  ;;  %v3916_v28 = vpop.f32.mrb[28].mxu0  ;;  %v5512_v36 = vpop.f32.mrb[28].mxu1 }
 0x11a   :  { %v2714_v31 = vadd.f32 %v2713_v23, %v2712_v22  ;;  %v1274_v32 = vadd.f32 %v3916_v28, %v5228_v33  ;;  %v1268_v35 = vpop.f32.mrb[29].mxu0  ;;  %6174 = vst [vmem:[#allocation5_spill] sm:$0xff] %v5512_v36  ;;  %v5516_v40 = vpop.f32.mrb[29].mxu1  ;;  %v2717_v46 = vsel %vm2663_vm2, %v2434_v26, 0.0 }
 0x11b   :  { %v2715_v38 = vsel %vm2663_vm2, %v2433_v27, 0.0  ;;  %v1269_v39 = vadd.f32 %v5228_v33, %v1268_v35 }
 0x11c   :  { %v2716_v43 = vadd.f32 %v2715_v38, %v2714_v31  ;;  %v2436_v47 = vmax.f32 %v1274_v32, 0.0 }
 0x11d   :  { %v2435_v49 = vmax.f32 %v1269_v39, 0.0  ;;  %v3919_v51 = vpop.f32.mrb[30].mxu0  ;;  %v4114_v59 = vpop.f32.mrb[30].mxu1 }
 0x11e   :  { %v2718_v52 = vadd.f32 %v2717_v46, %v2716_v43  ;;  %v1284_v53 = vadd.f32 %v3919_v51, %v5228_v33  ;;  %v1278_v57 = vpop.f32.mrb[31].mxu0  ;;  %v1934_v0 = vadd.f32 %v4114_v59, %v5228_v33  ;;  %v1928_v1 = vpop.f32.mrb[31].mxu1  ;;  %v2721_v7 = vsel %vm2663_vm2, %v2436_v47, 0.0 }
 0x11f   :  { %v2719_v60 = vsel %vm2663_vm2, %v2435_v49, 0.0  ;;  %v1279_v62 = vadd.f32 %v5228_v33, %v1278_v57  ;;  %v1929_v5 = vadd.f32 %v5228_v33, %v1928_v1 }
 0x120   :  { %v2720_v3 = vadd.f32 %v2719_v60, %v2718_v52  ;;  %v2438_v9 = vmax.f32 %v1284_v53, 0.0  ;;  %v2568_v14 = vmax.f32 %v1934_v0, 0.0 }
 0x121   :  { %v2437_v10 = vmax.f32 %v1279_v62, 0.0  ;;  %v3922_v13 = vpop.f32.mrb[32].mxu0  ;;  %v2567_v22 = vmax.f32 %v1929_v5, 0.0  ;;  %v4117_v23 = vpop.f32.mrb[32].mxu1 }
 0x122   :  { %v2722_v16 = vadd.f32 %v2721_v7, %v2720_v3  ;;  %v1294_v18 = vadd.f32 %v3922_v13, %v5228_v33  ;;  %v1288_v19 = vpop.f32.mrb[33].mxu0  ;;  %v3010_v28 = vsel %vm2663_vm2, %v2568_v14, 0.0  ;;  %v1944_v31 = vadd.f32 %v4117_v23, %v5228_v33  ;;  %v1938_v32 = vpop.f32.mrb[33].mxu1 }
 0x123   :  { %v2723_v26 = vsel %vm2663_vm2, %v2437_v10, 0.0  ;;  %v1289_v27 = vadd.f32 %v5228_v33, %v1288_v19  ;;  %v3009_v39 = vsel %vm2663_vm2, %v2567_v22, 0.0  ;;  %v1939_v43 = vadd.f32 %v5228_v33, %v1938_v32 }
 0x124   :  { %v2724_v35 = vadd.f32 %v2723_v26, %v2722_v16  ;;  %v2440_v38 = vmax.f32 %v1294_v18, 0.0  ;;  %v2725_v46 = vsel %vm2663_vm2, %v2438_v9, 0.0  ;;  %v3011_v51 = vadd.f32 %v3010_v28, %v3009_v39 }
 0x125   :  { %v2439_v47 = vmax.f32 %v1289_v27, 0.0  ;;  %v3925_v49 = vpop.f32.mrb[34].mxu0  ;;  %v2570_v52 = vmax.f32 %v1944_v31, 0.0  ;;  %v2569_v62 = vmax.f32 %v1939_v43, 0.0  ;;  %v4120_v0 = vpop.f32.mrb[34].mxu1 }
 0x126   :  { %v2726_v53 = vadd.f32 %v2725_v46, %v2724_v35  ;;  %v2734_v57 = vsel %vm2663_vm2, %v2440_v38, 0.0  ;;  %v1304_v59 = vadd.f32 %v3925_v49, %v5228_v33  ;;  %v1298_v60 = vpop.f32.mrb[35].mxu0  ;;  %v1954_v5 = vadd.f32 %v4120_v0, %v5228_v33  ;;  %v1948_v7 = vpop.f32.mrb[35].mxu1 }
 0x127   :  { %v2733_v1 = vsel %vm2663_vm2, %v2439_v47, 0.0  ;;  %v1299_v3 = vadd.f32 %v5228_v33, %v1298_v60  ;;  %v3012_v13 = vsel %vm2663_vm2, %v2569_v62, 0.0  ;;  %v3014_v18 = vsel %vm2663_vm2, %v2570_v52, 0.0 }
 0x128   :  { %v2735_v9 = vadd.f32 %v2734_v57, %v2733_v1  ;;  %v2442_v10 = vmax.f32 %v1304_v59, 0.0  ;;  %v3013_v19 = vadd.f32 %v3012_v13, %v3011_v51  ;;  %v1949_v22 = vadd.f32 %v5228_v33, %v1948_v7 }
 0x129   :  { %v2441_v14 = vmax.f32 %v1299_v3, 0.0  ;;  %v3928_v16 = vpop.f32.mrb[36].mxu0  ;;  %v2572_v27 = vmax.f32 %v1954_v5, 0.0  ;;  %v4123_v28 = vpop.f32.mrb[36].mxu1  ;;  %v2727_v60 = vrot.slane %v2726_v53, 4 }
 0x12a   :  { %v1314_v23 = vadd.f32 %v3928_v16, %v5228_v33  ;;  %v1308_v26 = vpop.f32.mrb[37].mxu0  ;;  %v2571_v35 = vmax.f32 %v1949_v22, 0.0  ;;  %v1958_v38 = vpop.f32.mrb[37].mxu1  ;;  %v2738_v39 = vsel %vm2663_vm2, %v2442_v10, 0.0  ;;  %v3015_v47 = vadd.f32 %v3014_v18, %v3013_v19 }
 0x12b   :  { %v2736_v31 = vsel %vm2663_vm2, %v2441_v14, 0.0  ;;  %v1309_v32 = vadd.f32 %v5228_v33, %v1308_v26  ;;  %v1964_v57 = vadd.f32 %v4123_v28, %v5228_v33  ;;  %v1959_v59 = vadd.f32 %v5228_v33, %v1958_v38 }
 0x12c   :  { %v2737_v43 = vadd.f32 %v2736_v31, %v2735_v9  ;;  %v2444_v46 = vmax.f32 %v1314_v23, 0.0  ;;  %v3016_v52 = vsel %vm2663_vm2, %v2571_v35, 0.0  ;;  %v3018_v3 = vsel %vm2663_vm2, %v2572_v27, 0.0 }
 0x12d   :  { %v2443_v49 = vmax.f32 %v1309_v32, 0.0  ;;  %v3931_v51 = vpop.f32.mrb[38].mxu0  ;;  %v4126_v5 = vpop.f32.mrb[38].mxu1  ;;  %v3017_v10 = vadd.f32 %v3016_v52, %v3015_v47  ;;  %v2574_v13 = vmax.f32 %v1964_v57, 0.0  ;;  %v5554_v16 = vadd.f32 %v5247_v41, %v5228_v33 }
 0x12e   :  { %v2739_v62 = vadd.f32 %v2738_v39, %v2737_v43  ;;  %v1324_v0 = vadd.f32 %v3931_v51, %v5228_v33  ;;  %v1318_v1 = vpop.f32.mrb[39].mxu0  ;;  %v1968_v14 = vpop.f32.mrb[39].mxu1  ;;  %v2742_v18 = vsel %vm2663_vm2, %v2444_v46, 0.0  ;;  %v2573_v22 = vmax.f32 %v1959_v59, 0.0 }
 0x12f   :  { %v2740_v7 = vsel %vm2663_vm2, %v2443_v49, 0.0  ;;  %v1319_v9 = vadd.f32 %v5228_v33, %v1318_v1  ;;  %v3019_v27 = vadd.f32 %v3018_v3, %v3017_v10  ;;  %v1974_v31 = vadd.f32 %v4126_v5, %v5228_v33 }
 0x130   :  { %v2741_v19 = vadd.f32 %v2740_v7, %v2739_v62  ;;  %v2446_v23 = vmax.f32 %v1324_v0, 0.0  ;;  %v5558_v32 = vadd.f32 %v2727_v60, %v2726_v53  ;;  %v3022_v43 = vsel %vm2663_vm2, %v2574_v13, 0.0 }
 0x131   :  { %v2445_v26 = vmax.f32 %v1319_v9, 0.0  ;;  %v3934_v28 = vpop.f32.mrb[40].mxu0  ;;  %v4129_v41 = vpop.f32.mrb[40].mxu1  ;;  %v3020_v49 = vsel %vm2663_vm2, %v2573_v22, 0.0  ;;  %v2576_v51 = vmax.f32 %v1974_v31, 0.0  ;;  %v1969_v53 = vadd.f32 %v5228_v33, %v1968_v14 }
 0x132   :  { %v2743_v35 = vadd.f32 %v2742_v18, %v2741_v19  ;;  %v1334_v38 = vadd.f32 %v3934_v28, %v5228_v33  ;;  %v1328_v39 = vpop.f32.mrb[41].mxu0  ;;  %v1978_v52 = vpop.f32.mrb[41].mxu1  ;;  %v3021_v62 = vadd.f32 %v3020_v49, %v3019_v27  ;;  %v2746_v60 = vsel %vm2663_vm2, %v2446_v23, 0.0 }
 0x133   :  { %v2744_v47 = vsel %vm2663_vm2, %v2445_v26, 0.0  ;;  %v1329_v46 = vadd.f32 %v5228_v33, %v1328_v39  ;;  %v1984_v3 = vadd.f32 %v4129_v41, %v5228_v33  ;;  %v1979_v5 = vadd.f32 %v5228_v33, %v1978_v52 }
 0x134   :  { %v2745_v57 = vadd.f32 %v2744_v47, %v2743_v35  ;;  %v2448_v59 = vmax.f32 %v1334_v38, 0.0  ;;  %v3026_v13 = vsel %vm2663_vm2, %v2576_v51, 0.0  ;;  %v2575_v18 = vmax.f32 %v1969_v53, 0.0 }
 0x135   :  { %v2447_v0 = vmax.f32 %v1329_v46, 0.0  ;;  %v3937_v1 = vpop.f32.mrb[42].mxu0  ;;  %v4132_v19 = vpop.f32.mrb[42].mxu1  ;;  %v3023_v26 = vadd.f32 %v3022_v43, %v3021_v62  ;;  %v2578_v23 = vmax.f32 %v1984_v3, 0.0  ;;  %v2577_v38 = vmax.f32 %v1979_v5, 0.0 }
 0x136   :  { %v2747_v7 = vadd.f32 %v2746_v60, %v2745_v57  ;;  %v1344_v9 = vadd.f32 %v3937_v1, %v5228_v33  ;;  %v1338_v10 = vpop.f32.mrb[43].mxu0  ;;  %v1988_v28 = vpop.f32.mrb[43].mxu1  ;;  %v2750_v27 = vsel %vm2663_vm2, %v2448_v59, 0.0  ;;  %v3024_v35 = vsel %vm2663_vm2, %v2575_v18, 0.0 }
 0x137   :  { %v2748_v22 = vsel %vm2663_vm2, %v2447_v0, 0.0  ;;  %v1339_v14 = vadd.f32 %v5228_v33, %v1338_v10  ;;  %v3025_v46 = vadd.f32 %v3024_v35, %v3023_v26  ;;  %v1994_v49 = vadd.f32 %v4132_v19, %v5228_v33 }
 0x138   :  { %v2749_v31 = vadd.f32 %v2748_v22, %v2747_v7  ;;  %v2450_v39 = vmax.f32 %v1344_v9, 0.0  ;;  %v3030_v43 = vsel %vm2663_vm2, %v2578_v23, 0.0  ;;  %v3028_v62 = vsel %vm2663_vm2, %v2577_v38, 0.0 }
 0x139   :  { %v2449_v41 = vmax.f32 %v1339_v14, 0.0  ;;  %v3940_v47 = vpop.f32.mrb[44].mxu0  ;;  %v4135_v53 = vpop.f32.mrb[44].mxu1  ;;  %v3027_v0 = vadd.f32 %v3026_v13, %v3025_v46  ;;  %v2580_v1 = vmax.f32 %v1994_v49, 0.0  ;;  %v1989_v9 = vadd.f32 %v5228_v33, %v1988_v28 }
 0x13a   :  { %v2751_v51 = vadd.f32 %v2750_v27, %v2749_v31  ;;  %v1354_v52 = vadd.f32 %v3940_v47, %v5228_v33  ;;  %v1348_v57 = vpop.f32.mrb[45].mxu0  ;;  %v1998_v3 = vpop.f32.mrb[45].mxu1  ;;  %v2004_v10 = vadd.f32 %v4135_v53, %v5228_v33  ;;  %v2754_v18 = vsel %vm2663_vm2, %v2450_v39, 0.0 }
 0x13b   :  { %v2752_v59 = vsel %vm2663_vm2, %v2449_v41, 0.0  ;;  %v1349_v60 = vadd.f32 %v5228_v33, %v1348_v57  ;;  %v3029_v14 = vadd.f32 %v3028_v62, %v3027_v0  ;;  %v1999_v26 = vadd.f32 %v5228_v33, %v1998_v3 }
 0x13c   :  { %v2753_v5 = vadd.f32 %v2752_v59, %v2751_v51  ;;  %v2452_v7 = vmax.f32 %v1354_v52, 0.0  ;;  %v3034_v13 = vsel %vm2663_vm2, %v2580_v1, 0.0  ;;  %v2579_v35 = vmax.f32 %v1989_v9, 0.0 }
 0x13d   :  { %v2451_v19 = vmax.f32 %v1349_v60, 0.0  ;;  %v3943_v22 = vpop.f32.mrb[46].mxu0  ;;  %v4138_v38 = vpop.f32.mrb[46].mxu1  ;;  %v3031_v47 = vadd.f32 %v3030_v43, %v3029_v14  ;;  %v2582_v46 = vmax.f32 %v2004_v10, 0.0  ;;  %v2581_v57 = vmax.f32 %v1999_v26, 0.0 }
 0x13e   :  { %v2755_v23 = vadd.f32 %v2754_v18, %v2753_v5  ;;  %v1364_v27 = vadd.f32 %v3943_v22, %v5228_v33  ;;  %v1358_v31 = vpop.f32.mrb[47].mxu0  ;;  %v2008_v39 = vpop.f32.mrb[47].mxu1  ;;  %v2758_v49 = vsel %vm2663_vm2, %v2452_v7, 0.0  ;;  %v3032_v52 = vsel %vm2663_vm2, %v2579_v35, 0.0 }
 0x13f   :  { %v2756_v41 = vsel %vm2663_vm2, %v2451_v19, 0.0  ;;  %v1359_v28 = vadd.f32 %v5228_v33, %v1358_v31  ;;  %v3033_v60 = vadd.f32 %v3032_v52, %v3031_v47  ;;  %v2014_v0 = vadd.f32 %v4138_v38, %v5228_v33 }
 0x140   :  { %v2757_v51 = vadd.f32 %v2756_v41, %v2755_v23  ;;  %v2454_v62 = vmax.f32 %v1364_v27, 0.0  ;;  %v3038_v43 = vsel %vm2663_vm2, %v2582_v46, 0.0  ;;  %v3036_v9 = vsel %vm2663_vm2, %v2581_v57, 0.0 }
 0x141   :  { %v2453_v53 = vmax.f32 %v1359_v28, 0.0  ;;  %v3946_v59 = vpop.f32.mrb[48].mxu0  ;;  %v4141_v10 = vpop.f32.mrb[48].mxu1  ;;  %v3035_v19 = vadd.f32 %v3034_v13, %v3033_v60  ;;  %v2584_v22 = vmax.f32 %v2014_v0, 0.0  ;;  %v2009_v27 = vadd.f32 %v5228_v33, %v2008_v39 }
 0x142   :  { %v2759_v1 = vadd.f32 %v2758_v49, %v2757_v51  ;;  %v1374_v3 = vadd.f32 %v3946_v59, %v5228_v33  ;;  %v1368_v5 = vpop.f32.mrb[49].mxu0  ;;  %v2018_v14 = vpop.f32.mrb[49].mxu1  ;;  %v2024_v31 = vadd.f32 %v4141_v10, %v5228_v33  ;;  %v2762_v35 = vsel %vm2663_vm2, %v2454_v62, 0.0 }
 0x143   :  { %v2760_v7 = vsel %vm2663_vm2, %v2453_v53, 0.0  ;;  %v1369_v18 = vadd.f32 %v5228_v33, %v1368_v5  ;;  %v3037_v28 = vadd.f32 %v3036_v9, %v3035_v19  ;;  %v2019_v47 = vadd.f32 %v5228_v33, %v2018_v14 }
 0x144   :  { %v2761_v26 = vadd.f32 %v2760_v7, %v2759_v1  ;;  %v2456_v23 = vmax.f32 %v1374_v3, 0.0  ;;  %v3042_v13 = vsel %vm2663_vm2, %v2584_v22, 0.0  ;;  %v2583_v52 = vmax.f32 %v2009_v27, 0.0 }
 0x145   :  { %v2455_v38 = vmax.f32 %v1369_v18, 0.0  ;;  %v3949_v41 = vpop.f32.mrb[50].mxu0  ;;  %v4144_v57 = vpop.f32.mrb[50].mxu1  ;;  %v3039_v59 = vadd.f32 %v3038_v43, %v3037_v28  ;;  %v2586_v60 = vmax.f32 %v2024_v31, 0.0  ;;  %v2585_v5 = vmax.f32 %v2019_v47, 0.0 }
 0x146   :  { %v2763_v46 = vadd.f32 %v2762_v35, %v2761_v26  ;;  %v1384_v49 = vadd.f32 %v3949_v41, %v5228_v33  ;;  %v1378_v51 = vpop.f32.mrb[51].mxu0  ;;  %v2028_v62 = vpop.f32.mrb[51].mxu1  ;;  %v2766_v0 = vsel %vm2663_vm2, %v2456_v23, 0.0  ;;  %v3040_v3 = vsel %vm2663_vm2, %v2583_v52, 0.0 }
 0x147   :  { %v2764_v53 = vsel %vm2663_vm2, %v2455_v38, 0.0  ;;  %v1379_v39 = vadd.f32 %v5228_v33, %v1378_v51  ;;  %v3041_v18 = vadd.f32 %v3040_v3, %v3039_v59  ;;  %v2034_v19 = vadd.f32 %v4144_v57, %v5228_v33 }
 0x148   :  { %v2765_v1 = vadd.f32 %v2764_v53, %v2763_v46  ;;  %v2458_v9 = vmax.f32 %v1384_v49, 0.0  ;;  %v3046_v43 = vsel %vm2663_vm2, %v2586_v60, 0.0  ;;  %v3044_v27 = vsel %vm2663_vm2, %v2585_v5, 0.0 }
 0x149   :  { %v2457_v10 = vmax.f32 %v1379_v39, 0.0  ;;  %v3952_v7 = vpop.f32.mrb[52].mxu0  ;;  %v4147_v31 = vpop.f32.mrb[52].mxu1  ;;  %v3043_v38 = vadd.f32 %v3042_v13, %v3041_v18  ;;  %v2588_v41 = vmax.f32 %v2034_v19, 0.0  ;;  %v2029_v49 = vadd.f32 %v5228_v33, %v2028_v62 }
 0x14a   :  { %v2767_v22 = vadd.f32 %v2766_v0, %v2765_v1  ;;  %v1394_v14 = vadd.f32 %v3952_v7, %v5228_v33  ;;  %v1388_v26 = vpop.f32.mrb[53].mxu0  ;;  %v2038_v28 = vpop.f32.mrb[53].mxu1  ;;  %v2044_v51 = vadd.f32 %v4147_v31, %v5228_v33  ;;  %v2770_v52 = vsel %vm2663_vm2, %v2458_v9, 0.0 }
 0x14b   :  { %v2768_v23 = vsel %vm2663_vm2, %v2457_v10, 0.0  ;;  %v1389_v35 = vadd.f32 %v5228_v33, %v1388_v26  ;;  %v3045_v39 = vadd.f32 %v3044_v27, %v3043_v38  ;;  %v2039_v59 = vadd.f32 %v5228_v33, %v2038_v28  ;;  %v5626_v38 = vld [vmem:[%s6168_s2] ss:$0 sm:$0xff] }
 0x14c   :  { %v2769_v47 = vadd.f32 %v2768_v23, %v2767_v22  ;;  %v2460_v46 = vmax.f32 %v1394_v14, 0.0  ;;  %v3050_v13 = vsel %vm2663_vm2, %v2588_v41, 0.0  ;;  %v2587_v3 = vmax.f32 %v2029_v49, 0.0 }
 0x14d   :  { %v2459_v57 = vmax.f32 %v1389_v35, 0.0  ;;  %v3955_v53 = vpop.f32.mrb[54].mxu0  ;;  %v4150_v5 = vpop.f32.mrb[54].mxu1  ;;  %v3047_v7 = vadd.f32 %v3046_v43, %v3045_v39  ;;  %v2590_v18 = vmax.f32 %v2044_v51, 0.0  ;;  %v2589_v26 = vmax.f32 %v2039_v59, 0.0 }
 0x14e   :  { %v2771_v60 = vadd.f32 %v2770_v52, %v2769_v47  ;;  %v1404_v0 = vadd.f32 %v3955_v53, %v5228_v33  ;;  %v1398_v1 = vpop.f32.mrb[55].mxu0  ;;  %v2048_v9 = vpop.f32.mrb[55].mxu1  ;;  %v2774_v19 = vsel %vm2663_vm2, %v2460_v46, 0.0  ;;  %v3048_v14 = vsel %vm2663_vm2, %v2587_v3, 0.0 }
 0x14f   :  { %v2772_v10 = vsel %vm2663_vm2, %v2459_v57, 0.0  ;;  %v1399_v62 = vadd.f32 %v5228_v33, %v1398_v1  ;;  %v3049_v35 = vadd.f32 %v3048_v14, %v3047_v7  ;;  %v2054_v33 = vadd.f32 %v5626_v38, %v4150_v5 }
 0x150   :  { %v2773_v22 = vadd.f32 %v2772_v10, %v2771_v60  ;;  %v2462_v27 = vmax.f32 %v1404_v0, 0.0  ;;  %v3054_v47 = vsel %vm2663_vm2, %v2590_v18, 0.0  ;;  %v3052_v46 = vsel %vm2663_vm2, %v2589_v26, 0.0 }
 0x151   :  { %v2461_v31 = vmax.f32 %v1399_v62, 0.0  ;;  %v3958_v23 = vpop.f32.mrb[56].mxu0  ;;  %v4153_v49 = vpop.f32.mrb[56].mxu1  ;;  %v3051_v57 = vadd.f32 %v3050_v13, %v3049_v35  ;;  %v2592_v53 = vmax.f32 %v2054_v33, 0.0  ;;  %v2049_v0 = vadd.f32 %v5626_v38, %v2048_v9 }
 0x152   :  { %v2775_v43 = vadd.f32 %v2774_v19, %v2773_v22  ;;  %v1414_v41 = vadd.f32 %v5626_v38, %v3958_v23  ;;  %v1408_v28 = vpop.f32.mrb[57].mxu0  ;;  %v2058_v39 = vpop.f32.mrb[57].mxu1  ;;  %v2064_v1 = vadd.f32 %v5626_v38, %v4153_v49  ;;  %v2778_v3 = vsel %vm2663_vm2, %v2462_v27, 0.0 }
 0x153   :  { %v2776_v51 = vsel %vm2663_vm2, %v2461_v31, 0.0  ;;  %v1409_v52 = vadd.f32 %v5626_v38, %v1408_v28  ;;  %v3053_v62 = vadd.f32 %v3052_v46, %v3051_v57  ;;  %v2059_v7 = vadd.f32 %v5626_v38, %v2058_v39 }
 0x154   :  { %v2777_v59 = vadd.f32 %v2776_v51, %v2775_v43  ;;  %v2464_v60 = vmax.f32 %v1414_v41, 0.0  ;;  %v3058_v13 = vsel %vm2663_vm2, %v2592_v53, 0.0  ;;  %v2591_v14 = vmax.f32 %v2049_v0, 0.0 }
 0x155   :  { %v2463_v5 = vmax.f32 %v1409_v52, 0.0  ;;  %v3961_v10 = vpop.f32.mrb[58].mxu0  ;;  %v4156_v26 = vpop.f32.mrb[58].mxu1  ;;  %v3055_v23 = vadd.f32 %v3054_v47, %v3053_v62  ;;  %v2594_v35 = vmax.f32 %v2064_v1, 0.0  ;;  %v2593_v28 = vmax.f32 %v2059_v7, 0.0 }
 0x156   :  { %v2779_v18 = vadd.f32 %v2778_v3, %v2777_v59  ;;  %v1424_v19 = vadd.f32 %v5626_v38, %v3961_v10  ;;  %v1418_v22 = vpop.f32.mrb[59].mxu0  ;;  %v2068_v27 = vpop.f32.mrb[59].mxu1  ;;  %v2782_v33 = vsel %vm2663_vm2, %v2464_v60, 0.0  ;;  %v3056_v41 = vsel %vm2663_vm2, %v2591_v14, 0.0 }
 0x157   :  { %v2780_v31 = vsel %vm2663_vm2, %v2463_v5, 0.0  ;;  %v1419_v9 = vadd.f32 %v5626_v38, %v1418_v22  ;;  %v3057_v52 = vadd.f32 %v3056_v41, %v3055_v23  ;;  %v2074_v57 = vadd.f32 %v5626_v38, %v4156_v26 }
 0x158   :  { %v2781_v43 = vadd.f32 %v2780_v31, %v2779_v18  ;;  %v2466_v46 = vmax.f32 %v1424_v19, 0.0  ;;  %v3062_v47 = vsel %vm2663_vm2, %v2594_v35, 0.0  ;;  %v3060_v0 = vsel %vm2663_vm2, %v2593_v28, 0.0 }
 0x159   :  { %v2465_v49 = vmax.f32 %v1419_v9, 0.0  ;;  %v3964_v51 = vpop.f32.mrb[60].mxu0  ;;  %v4159_v1 = vpop.f32.mrb[60].mxu1  ;;  %v3059_v5 = vadd.f32 %v3058_v13, %v3057_v52  ;;  %v2596_v10 = vmax.f32 %v2074_v57, 0.0  ;;  %v2069_v19 = vadd.f32 %v5626_v38, %v2068_v27 }
 0x15a   :  { %v2783_v53 = vadd.f32 %v2782_v33, %v2781_v43  ;;  %v1434_v39 = vadd.f32 %v5626_v38, %v3964_v51  ;;  %v1428_v59 = vpop.f32.mrb[61].mxu0  ;;  %v2078_v62 = vpop.f32.mrb[61].mxu1  ;;  %v2084_v22 = vadd.f32 %v5626_v38, %v4159_v1  ;;  %v2786_v14 = vsel %vm2663_vm2, %v2466_v46, 0.0 }
 0x15b   :  { %v2784_v60 = vsel %vm2663_vm2, %v2465_v49, 0.0  ;;  %v1429_v3 = vadd.f32 %v5626_v38, %v1428_v59  ;;  %v3061_v9 = vadd.f32 %v3060_v0, %v3059_v5  ;;  %v2079_v23 = vadd.f32 %v5626_v38, %v2078_v62 }
 0x15c   :  { %v2785_v7 = vadd.f32 %v2784_v60, %v2783_v53  ;;  %v2468_v18 = vmax.f32 %v1434_v39, 0.0  ;;  %v3066_v13 = vsel %vm2663_vm2, %v2596_v10, 0.0  ;;  %v2595_v41 = vmax.f32 %v2069_v19, 0.0 }
 0x15d   :  { %v2467_v26 = vmax.f32 %v1429_v3, 0.0  ;;  %v3967_v31 = vpop.f32.mrb[62].mxu0  ;;  %v4162_v28 = vpop.f32.mrb[62].mxu1  ;;  %v3063_v46 = vadd.f32 %v3062_v47, %v3061_v9  ;;  %v2598_v39 = vmax.f32 %v2084_v22, 0.0  ;;  %v2597_v59 = vmax.f32 %v2079_v23, 0.0 }
 0x15e   :  { %v2787_v35 = vadd.f32 %v2786_v14, %v2785_v7  ;;  %v1444_v33 = vadd.f32 %v5626_v38, %v3967_v31  ;;  %v1438_v43 = vpop.f32.mrb[63].mxu0  ;;  %v2790_v49 = vsel %vm2663_vm2, %v2468_v18, 0.0  ;;  %v2088_v52 = vpop.f32.mrb[63].mxu1  ;;  %v3064_v53 = vsel %vm2663_vm2, %v2595_v41, 0.0 }
 0x15f   :  { %v2788_v27 = vsel %vm2663_vm2, %v2467_v26, 0.0  ;;  %v1439_v51 = vadd.f32 %v5626_v38, %v1438_v43  ;;  %v3065_v3 = vadd.f32 %v3064_v53, %v3063_v46  ;;  %v2094_v5 = vadd.f32 %v5626_v38, %v4162_v28 }
 0x160   :  { %v2789_v57 = vadd.f32 %v2788_v27, %v2787_v35  ;;  %v2470_v0 = vmax.f32 %v1444_v33, 0.0  ;;  %v2729_v10 = vrot.slane %v5558_v32, 2  ;;  %v3068_v47 = vsel %vm2663_vm2, %v2597_v59, 0.0 }
 0x161   :  { %v2469_v1 = vmax.f32 %v1439_v51, 0.0  ;;  %v3970_v60 = vpop.f32.mrb[64].mxu0  ;;  %v4165_v19 = vpop.f32.mrb[64].mxu1  ;;  %v3067_v26 = vadd.f32 %v3066_v13, %v3065_v3  ;;  %v2600_v31 = vmax.f32 %v2094_v5, 0.0  ;;  %v3070_v33 = vsel %vm2663_vm2, %v2598_v39, 0.0 }
 0x162   :  { %v2791_v62 = vadd.f32 %v2790_v49, %v2789_v57  ;;  %v1454_v7 = vadd.f32 %v5626_v38, %v3970_v60  ;;  %v1448_v18 = vpop.f32.mrb[65].mxu0  ;;  %v2098_v9 = vpop.f32.mrb[65].mxu1  ;;  %v2089_v43 = vadd.f32 %v5626_v38, %v2088_v52  ;;  %v2794_v41 = vsel %vm2663_vm2, %v2470_v0, 0.0 }
 0x163   :  { %v2792_v14 = vsel %vm2663_vm2, %v2469_v1, 0.0  ;;  %v1449_v22 = vadd.f32 %v5626_v38, %v1448_v18  ;;  %v3069_v27 = vadd.f32 %v3068_v47, %v3067_v26  ;;  %v3079_v51 = vsel %vm2663_vm2, %v2600_v31, 0.0 }
 0x164   :  { %v2793_v23 = vadd.f32 %v2792_v14, %v2791_v62  ;;  %v2472_v35 = vmax.f32 %v1454_v7, 0.0  ;;  %v2599_v59 = vmax.f32 %v2089_v43, 0.0  ;;  %v2104_v0 = vadd.f32 %v5626_v38, %v4165_v19 }
 0x165   :  { %v2471_v28 = vmax.f32 %v1449_v22, 0.0  ;;  %v3973_v49 = vpop.f32.mrb[66].mxu0  ;;  %v4168_v1 = vpop.f32.mrb[66].mxu1  ;;  %v5674_v52 = vadd.f32 %v3070_v33, %v3069_v27  ;;  %v2730_v5 = vadd.f32 %v2729_v10, %v5558_v32  ;;  %v5681_v47 = vadd.f32 %v5626_v38, %v5255_v44 }
 0x166   :  { %v2795_v46 = vadd.f32 %v2794_v41, %v2793_v23  ;;  %v2803_v57 = vsel %vm2663_vm2, %v2472_v35, 0.0  ;;  %v1464_v13 = vadd.f32 %v5626_v38, %v3973_v49  ;;  %v1458_v53 = vpop.f32.mrb[67].mxu0  ;;  %v2108_v3 = vpop.f32.mrb[67].mxu1  ;;  %v3078_v18 = vsel %vm2663_vm2, %v2599_v59, 0.0 }
 0x167   :  { %v2802_v60 = vsel %vm2663_vm2, %v2471_v28, 0.0  ;;  %v1459_v39 = vadd.f32 %v5626_v38, %v1458_v53  ;;  %6175 = vst [vmem:[#allocation6_spill] sm:$0xff] %v5674_v52  ;;  %v3080_v31 = vadd.f32 %v3079_v51, %v3078_v18  ;;  %v2099_v33 = vadd.f32 %v5626_v38, %v2098_v9 }
 0x168   :  { %v2796_v62 = vrot.slane %v2795_v46, 4  ;;  %v2804_v7 = vadd.f32 %v2803_v57, %v2802_v60  ;;  %v2474_v14 = vmax.f32 %v1464_v13, 0.0  ;;  %v2602_v41 = vmax.f32 %v2104_v0, 0.0 }
 0x169   :  { %v2473_v22 = vmax.f32 %v1459_v39, 0.0  ;;  %v3976_v26 = vpop.f32.mrb[68].mxu0  ;;  %v4171_v32 = vpop.f32.mrb[68].mxu1  ;;  %v2114_v44 = vadd.f32 %v5626_v38, %v4168_v1  ;;  %v2731_v49 = vrot.slane %v2730_v5, 1  ;;  %v2601_v51 = vmax.f32 %v2099_v33, 0.0 }
 0x16a   :  { %v2797_v23 = vadd.f32 %v2796_v62, %v2795_v46  ;;  %v1474_v35 = vadd.f32 %v5626_v38, %v3976_v26  ;;  %v1468_v19 = vpop.f32.mrb[69].mxu0  ;;  %v2118_v28 = vpop.f32.mrb[69].mxu1  ;;  %v2807_v46 = vsel %vm2663_vm2, %v2474_v14, 0.0  ;;  %v2109_v9 = vadd.f32 %v5626_v38, %v2108_v3 }
 0x16b   :  { %v2805_v10 = vsel %vm2663_vm2, %v2473_v22, 0.0  ;;  %v1469_v43 = vadd.f32 %v5626_v38, %v1468_v19  ;;  %v2604_v0 = vmax.f32 %v2114_v44, 0.0  ;;  %v3081_v14 = vsel %vm2663_vm2, %v2601_v51, 0.0 }
 0x16c   :  { %v2798_v27 = vrot.slane %v2797_v23, 2  ;;  %v2806_v57 = vadd.f32 %v2805_v10, %v2804_v7  ;;  %v2476_v13 = vmax.f32 %v1474_v35, 0.0  ;;  %v3083_v7 = vsel %vm2663_vm2, %v2602_v41, 0.0 }
 0x16d   :  { %v2475_v53 = vmax.f32 %v1469_v43, 0.0  ;;  %v3979_v59 = vpop.f32.mrb[70].mxu0  ;;  %v4174_v22 = vpop.f32.mrb[70].mxu1  ;;  %v3082_v3 = vadd.f32 %v3081_v14, %v3080_v31  ;;  %v2603_v44 = vmax.f32 %v2109_v9, 0.0  ;;  %v3087_v41 = vsel %vm2663_vm2, %v2604_v0, 0.0 }
 0x16e   :  { %v2799_v60 = vadd.f32 %v2798_v27, %v2797_v23  ;;  %v2808_v39 = vadd.f32 %v2807_v46, %v2806_v57  ;;  %v1484_v62 = vadd.f32 %v5626_v38, %v3979_v59  ;;  %v1478_v18 = vpop.f32.mrb[71].mxu0  ;;  %v2128_v35 = vpop.f32.mrb[71].mxu1  ;;  %v2732_v23 = vadd.f32 %v2731_v49, %v2730_v5 }
 0x16f   :  { %v2809_v1 = vsel %vm2663_vm2, %v2475_v53, 0.0  ;;  %v1479_v26 = vadd.f32 %v5626_v38, %v1478_v18  ;;  %v2811_v43 = vsel %vm2663_vm2, %v2476_v13, 0.0  ;;  %v3084_v5 = vadd.f32 %v3083_v7, %v3082_v3 }
 0x170   :  { %v2800_v19 = vrot.slane %v2799_v60, 1  ;;  %v2810_v33 = vadd.f32 %v2809_v1, %v2808_v39  ;;  %v2478_v10 = vmax.f32 %v1484_v62, 0.0  ;;  %v3085_v62 = vsel %vm2663_vm2, %v2603_v44, 0.0 }
 0x171   :  { %v2477_v27 = vmax.f32 %v1479_v26, 0.0  ;;  %v3982_v57 = vpop.f32.mrb[72].mxu0  ;;  %v4177_v52 = vpop.f32.mrb[72].mxu1  ;;  %v3086_v14 = vadd.f32 %v3085_v62, %v3084_v5  ;;  %v2124_v0 = vadd.f32 %v5626_v38, %v4171_v32 }
 0x172   :  { %v2801_v46 = vadd.f32 %v2800_v19, %v2799_v60  ;;  %v2812_v59 = vadd.f32 %v2811_v43, %v2810_v33  ;;  %v1494_v53 = vadd.f32 %v5626_v38, %v3982_v57  ;;  %v1488_v18 = vpop.f32.mrb[73].mxu0  ;;  %v2815_v51 = vsel %vm2663_vm2, %v2478_v10, 0.0  ;;  %v2138_v49 = vpop.f32.mrb[73].mxu1 }
 0x173   :  { %v2813_v39 = vsel %vm2663_vm2, %v2477_v27, 0.0  ;;  %v1489_v31 = vadd.f32 %v5626_v38, %v1488_v18  ;;  %v2119_v19 = vadd.f32 %v5626_v38, %v2118_v28  ;;  %v2606_v44 = vmax.f32 %v2124_v0, 0.0 }
 0x174   :  { %v5702_v13 = vsel %vm3235_vm3, %v2801_v46, %v2732_v23  ;;  %v2814_v9 = vadd.f32 %v2813_v39, %v2812_v59  ;;  %v2480_v60 = vmax.f32 %v1494_v53, 0.0  ;;  %v2134_v23 = vadd.f32 %v5626_v38, %v4174_v22 }
 0x175   :  { %v2479_v1 = vmax.f32 %v1489_v31, 0.0  ;;  %v3985_v26 = vpop.f32.mrb[74].mxu0  ;;  %v4180_v43 = vpop.f32.mrb[74].mxu1  ;;  %v2605_v46 = vmax.f32 %v2119_v19, 0.0  ;;  %v3088_v18 = vadd.f32 %v3087_v41, %v3086_v14  ;;  %v2129_v22 = vadd.f32 %v5626_v38, %v2128_v35 }
 0x176   :  { %v2819_v33 = vsel %vm2663_vm2, %v2480_v60, 0.0  ;;  %v2816_v10 = vadd.f32 %v2815_v51, %v2814_v9  ;;  %v1504_v7 = vadd.f32 %v5626_v38, %v3985_v26  ;;  %v1498_v3 = vpop.f32.mrb[75].mxu0  ;;  %v2148_v59 = vpop.f32.mrb[75].mxu1  ;;  %v2608_v28 = vmax.f32 %v2134_v23, 0.0 }
 0x177   :  { %v2817_v27 = vsel %vm2663_vm2, %v2479_v1, 0.0  ;;  %v1499_v57 = vadd.f32 %v5626_v38, %v1498_v3  ;;  %v3091_v51 = vsel %vm2663_vm2, %v2606_v44, 0.0  ;;  %v3089_v5 = vsel %vm2663_vm2, %v2605_v46, 0.0 }
 0x178   :  { %v2818_v53 = vadd.f32 %v2817_v27, %v2816_v10  ;;  %v2482_v32 = vmax.f32 %v1504_v7, 0.0  ;;  %v3090_v26 = vadd.f32 %v3089_v5, %v3088_v18  ;;  %v3095_v14 = vsel %vm2663_vm2, %v2608_v28, 0.0 }
 0x179   :  { %v2481_v39 = vmax.f32 %v1499_v57, 0.0  ;;  %v3988_v31 = vpop.f32.mrb[76].mxu0  ;;  %v4183_v0 = vpop.f32.mrb[76].mxu1  ;;  %v2607_v10 = vmax.f32 %v2129_v22, 0.0  ;;  %v2144_v35 = vadd.f32 %v5626_v38, %v4177_v52  ;;  %v2139_v46 = vadd.f32 %v5626_v38, %v2138_v49 }
 0x17a   :  { %v2823_v9 = vsel %vm2663_vm2, %v2482_v32, 0.0  ;;  %v2820_v60 = vadd.f32 %v2819_v33, %v2818_v53  ;;  %v1514_v62 = vadd.f32 %v5626_v38, %v3988_v31  ;;  %v1508_v1 = vpop.f32.mrb[77].mxu0  ;;  %v2158_v7 = vpop.f32.mrb[77].mxu1  ;;  %v3092_v27 = vadd.f32 %v3091_v51, %v3090_v26 }
 0x17b   :  { %v2821_v19 = vsel %vm2663_vm2, %v2481_v39, 0.0  ;;  %v1509_v41 = vadd.f32 %v5626_v38, %v1508_v1  ;;  %v3093_v44 = vsel %vm2663_vm2, %v2607_v10, 0.0  ;;  %v2154_v53 = vadd.f32 %v5626_v38, %v4180_v43 }
 0x17c   :  { %v2822_v3 = vadd.f32 %v2821_v19, %v2820_v60  ;;  %v2484_v23 = vmax.f32 %v1514_v62, 0.0  ;;  %v3094_v31 = vadd.f32 %v3093_v44, %v3092_v27  ;;  %v2610_v22 = vmax.f32 %v2144_v35, 0.0  ;;  %v3219_v44 = vld [vmem:[%s6169_s3 + $0x18] sm:$0xff] }
 0x17d   :  { %v2483_v57 = vmax.f32 %v1509_v41, 0.0  ;;  %v3991_v33 = vpop.f32.mrb[78].mxu0  ;;  %v4186_v5 = vpop.f32.mrb[78].mxu1  ;;  %v2609_v60 = vmax.f32 %v2139_v46, 0.0  ;;  %v2612_v19 = vmax.f32 %v2154_v53, 0.0 }
 0x17e   :  { %v2827_v32 = vsel %vm2663_vm2, %v2484_v23, 0.0  ;;  %v2824_v18 = vadd.f32 %v2823_v9, %v2822_v3  ;;  %v1524_v28 = vadd.f32 %v5626_v38, %v3991_v33  ;;  %v1518_v39 = vpop.f32.mrb[79].mxu0  ;;  %v2168_v62 = vpop.f32.mrb[79].mxu1  ;;  %v3096_v49 = vadd.f32 %v3095_v14, %v3094_v31  ;;  %v3218_v14 = vld [vmem:[%s6169_s3 + $0x10] sm:$0xff] }
 0x17f   :  { %v2825_v51 = vsel %vm2663_vm2, %v2483_v57, 0.0  ;;  %v1519_v52 = vadd.f32 %v5626_v38, %v1518_v39  ;;  %v3099_v9 = vsel %vm2663_vm2, %v2610_v22, 0.0  ;;  %v3097_v10 = vsel %vm2663_vm2, %v2609_v60, 0.0 }
 0x180   :  { %v2826_v1 = vadd.f32 %v2825_v51, %v2824_v18  ;;  %v2486_v26 = vmax.f32 %v1524_v28, 0.0  ;;  %v2149_v3 = vadd.f32 %v5626_v38, %v2148_v59  ;;  %v3098_v33 = vadd.f32 %v3097_v10, %v3096_v49 }
 0x181   :  { %v2485_v43 = vmax.f32 %v1519_v52, 0.0  ;;  %v3994_v41 = vpop.f32.mrb[80].mxu0  ;;  %v4189_v46 = vpop.f32.mrb[80].mxu1  ;;  %v3103_v18 = vsel %vm2663_vm2, %v2612_v19, 0.0  ;;  %v2164_v52 = vadd.f32 %v5626_v38, %v4183_v0  ;;  %v4279_v49 = vpack.c.bf16 %v3219_v44, %v3218_v14 }
 0x182   :  { %v2831_v23 = vsel %vm2663_vm2, %v2486_v26, 0.0  ;;  %v2828_v27 = vadd.f32 %v2827_v32, %v2826_v1  ;;  %v1534_v57 = vadd.f32 %v5626_v38, %v3994_v41  ;;  %v1528_v35 = vpop.f32.mrb[81].mxu0  ;;  %v2611_v32 = vmax.f32 %v2149_v3, 0.0  ;;  %v2178_v28 = vpop.f32.mrb[81].mxu1 }
 0x183   :  { %v2829_v53 = vsel %vm2663_vm2, %v2485_v43, 0.0  ;;  %v1529_v59 = vadd.f32 %v5626_v38, %v1528_v35  ;;  %v3100_v51 = vadd.f32 %v3099_v9, %v3098_v33  ;;  %v2159_v26 = vadd.f32 %v5626_v38, %v2158_v7  ;;  %4280 = vmatpush3.bf16.msra.mxu1 %v4279_v49 }
 0x184   :  { %v2830_v39 = vadd.f32 %v2829_v53, %v2828_v27  ;;  %v2488_v31 = vmax.f32 %v1534_v57, 0.0  ;;  %v3101_v1 = vsel %vm2663_vm2, %v2611_v32, 0.0  ;;  %v2614_v0 = vmax.f32 %v2164_v52, 0.0 }
 0x185   :  { %v2487_v22 = vmax.f32 %v1529_v59, 0.0  ;;  %v3997_v60 = vpop.f32.mrb[82].mxu0  ;;  %v3102_v3 = vadd.f32 %v3101_v1, %v3100_v51  ;;  %v4192_v35 = vpop.f32.mrb[82].mxu1  ;;  %v2613_v57 = vmax.f32 %v2159_v26, 0.0  ;;  %v2174_v14 = vadd.f32 %v5626_v38, %v4186_v5 }
 0x186   :  { %v2835_v43 = vsel %vm2663_vm2, %v2488_v31, 0.0  ;;  %v2832_v41 = vadd.f32 %v2831_v23, %v2830_v39  ;;  %v1544_v10 = vadd.f32 %v5626_v38, %v3997_v60  ;;  %v1538_v19 = vpop.f32.mrb[83].mxu0  ;;  %v2188_v33 = vpop.f32.mrb[83].mxu1  ;;  %v3107_v32 = vsel %vm2663_vm2, %v2614_v0, 0.0 }
 0x187   :  { %v2833_v27 = vsel %vm2663_vm2, %v2487_v22, 0.0  ;;  %v1539_v9 = vadd.f32 %v5626_v38, %v1538_v19  ;;  %v3104_v7 = vadd.f32 %v3103_v18, %v3102_v3  ;;  %v3105_v39 = vsel %vm2663_vm2, %v2613_v57, 0.0 }
 0x188   :  { %v2834_v53 = vadd.f32 %v2833_v27, %v2832_v41  ;;  %v2490_v59 = vmax.f32 %v1544_v10, 0.0  ;;  %v2169_v31 = vadd.f32 %v5626_v38, %v2168_v62  ;;  %v2616_v49 = vmax.f32 %v2174_v14, 0.0 }
 0x189   :  { %v2489_v44 = vmax.f32 %v1539_v9, 0.0  ;;  %v4000_v23 = vpop.f32.mrb[84].mxu0  ;;  %v3106_v1 = vadd.f32 %v3105_v39, %v3104_v7  ;;  %v4195_v26 = vpop.f32.mrb[84].mxu1  ;;  %v2184_v62 = vadd.f32 %v5626_v38, %v4189_v46 }
 0x18a   :  { %v2839_v51 = vsel %vm2663_vm2, %v2490_v59, 0.0  ;;  %v2836_v22 = vadd.f32 %v2835_v43, %v2834_v53  ;;  %v1554_v52 = vadd.f32 %v5626_v38, %v4000_v23  ;;  %v1548_v60 = vpop.f32.mrb[85].mxu0  ;;  %v2615_v41 = vmax.f32 %v2169_v31, 0.0  ;;  %v2198_v10 = vpop.f32.mrb[85].mxu1 }
 0x18b   :  { %v2837_v18 = vsel %vm2663_vm2, %v2489_v44, 0.0  ;;  %v1549_v5 = vadd.f32 %v5626_v38, %v1548_v60  ;;  %v3108_v27 = vadd.f32 %v3107_v32, %v3106_v1  ;;  %v3111_v43 = vsel %vm2663_vm2, %v2616_v49, 0.0 }
 0x18c   :  { %v2838_v19 = vadd.f32 %v2837_v18, %v2836_v22  ;;  %v2492_v3 = vmax.f32 %v1554_v52, 0.0  ;;  %v3109_v57 = vsel %vm2663_vm2, %v2615_v41, 0.0  ;;  %v2179_v53 = vadd.f32 %v5626_v38, %v2178_v28 }
 0x18d   :  { %v2491_v9 = vmax.f32 %v1549_v5, 0.0  ;;  %v4003_v0 = vpop.f32.mrb[86].mxu0  ;;  %v3110_v23 = vadd.f32 %v3109_v57, %v3108_v27  ;;  %v4198_v39 = vpop.f32.mrb[86].mxu1  ;;  %v2618_v31 = vmax.f32 %v2184_v62, 0.0  ;;  %v2194_v28 = vadd.f32 %v5626_v38, %v4192_v35 }
 0x18e   :  { %v2843_v59 = vsel %vm2663_vm2, %v2492_v3, 0.0  ;;  %v2840_v7 = vadd.f32 %v2839_v51, %v2838_v19  ;;  %v1564_v14 = vadd.f32 %v5626_v38, %v4003_v0  ;;  %v1558_v44 = vpop.f32.mrb[87].mxu0  ;;  %v2617_v22 = vmax.f32 %v2179_v53, 0.0  ;;  %v2208_v52 = vpop.f32.mrb[87].mxu1 }
 0x18f   :  { %v2841_v32 = vsel %vm2663_vm2, %v2491_v9, 0.0  ;;  %v1559_v46 = vadd.f32 %v5626_v38, %v1558_v44  ;;  %v3112_v18 = vadd.f32 %v3111_v43, %v3110_v23  ;;  %v3115_v51 = vsel %vm2663_vm2, %v2618_v31, 0.0 }
 0x190   :  { %v2842_v60 = vadd.f32 %v2841_v32, %v2840_v7  ;;  %v2494_v1 = vmax.f32 %v1564_v14, 0.0  ;;  %v3113_v41 = vsel %vm2663_vm2, %v2617_v22, 0.0  ;;  %v2189_v19 = vadd.f32 %v5626_v38, %v2188_v33 }
 0x191   :  { %v2493_v5 = vmax.f32 %v1559_v46, 0.0  ;;  %v4006_v49 = vpop.f32.mrb[88].mxu0  ;;  %v3114_v0 = vadd.f32 %v3113_v41, %v3112_v18  ;;  %v4201_v57 = vpop.f32.mrb[88].mxu1  ;;  %v2620_v53 = vmax.f32 %v2194_v28, 0.0  ;;  %v2204_v33 = vadd.f32 %v5626_v38, %v4195_v26 }
 0x192   :  { %v2847_v3 = vsel %vm2663_vm2, %v2494_v1, 0.0  ;;  %v2844_v27 = vadd.f32 %v2843_v59, %v2842_v60  ;;  %v1574_v62 = vadd.f32 %v5626_v38, %v4006_v49  ;;  %v1568_v9 = vpop.f32.mrb[89].mxu0  ;;  %v2619_v7 = vmax.f32 %v2189_v19, 0.0  ;;  %v2218_v14 = vpop.f32.mrb[89].mxu1 }
 0x193   :  { %v2845_v43 = vsel %vm2663_vm2, %v2493_v5, 0.0  ;;  %v1569_v35 = vadd.f32 %v5626_v38, %v1568_v9  ;;  %v3116_v32 = vadd.f32 %v3115_v51, %v3114_v0  ;;  %v3119_v59 = vsel %vm2663_vm2, %v2620_v53, 0.0 }
 0x194   :  { %v2846_v44 = vadd.f32 %v2845_v43, %v2844_v27  ;;  %v2496_v23 = vmax.f32 %v1574_v62, 0.0  ;;  %v3117_v22 = vsel %vm2663_vm2, %v2619_v7, 0.0  ;;  %v2199_v60 = vadd.f32 %v5626_v38, %v2198_v10 }
 0x195   :  { %v2495_v46 = vmax.f32 %v1569_v35, 0.0  ;;  %v4009_v31 = vpop.f32.mrb[90].mxu0  ;;  %v3118_v49 = vadd.f32 %v3117_v22, %v3116_v32  ;;  %v4204_v41 = vpop.f32.mrb[90].mxu1  ;;  %v2622_v19 = vmax.f32 %v2204_v33, 0.0  ;;  %v2214_v10 = vadd.f32 %v5626_v38, %v4198_v39 }
 0x196   :  { %v2851_v1 = vsel %vm2663_vm2, %v2496_v23, 0.0  ;;  %v2848_v18 = vadd.f32 %v2847_v3, %v2846_v44  ;;  %v1584_v28 = vadd.f32 %v5626_v38, %v4009_v31  ;;  %v1578_v5 = vpop.f32.mrb[91].mxu0  ;;  %v2621_v27 = vmax.f32 %v2199_v60, 0.0  ;;  %v2228_v62 = vpop.f32.mrb[91].mxu1 }
 0x197   :  { %v2849_v51 = vsel %vm2663_vm2, %v2495_v46, 0.0  ;;  %v1579_v26 = vadd.f32 %v5626_v38, %v1578_v5  ;;  %v3120_v43 = vadd.f32 %v3119_v59, %v3118_v49  ;;  %v3123_v3 = vsel %vm2663_vm2, %v2622_v19, 0.0 }
 0x198   :  { %v2850_v9 = vadd.f32 %v2849_v51, %v2848_v18  ;;  %v2498_v0 = vmax.f32 %v1584_v28, 0.0  ;;  %v3121_v7 = vsel %vm2663_vm2, %v2621_v27, 0.0  ;;  %v2209_v44 = vadd.f32 %v5626_v38, %v2208_v52 }
 0x199   :  { %v2497_v35 = vmax.f32 %v1579_v26, 0.0  ;;  %v4012_v53 = vpop.f32.mrb[92].mxu0  ;;  %v3122_v31 = vadd.f32 %v3121_v7, %v3120_v43  ;;  %v4207_v22 = vpop.f32.mrb[92].mxu1  ;;  %v2624_v60 = vmax.f32 %v2214_v10, 0.0  ;;  %v2224_v52 = vadd.f32 %v5626_v38, %v4201_v57 }
 0x19a   :  { %v2855_v23 = vsel %vm2663_vm2, %v2498_v0, 0.0  ;;  %v2852_v32 = vadd.f32 %v2851_v1, %v2850_v9  ;;  %v1594_v33 = vadd.f32 %v5626_v38, %v4012_v53  ;;  %v1588_v46 = vpop.f32.mrb[93].mxu0  ;;  %v2623_v18 = vmax.f32 %v2209_v44, 0.0  ;;  %v2238_v28 = vpop.f32.mrb[93].mxu1 }
 0x19b   :  { %v2853_v59 = vsel %vm2663_vm2, %v2497_v35, 0.0  ;;  %v1589_v39 = vadd.f32 %v5626_v38, %v1588_v46  ;;  %v3124_v51 = vadd.f32 %v3123_v3, %v3122_v31  ;;  %v3127_v1 = vsel %vm2663_vm2, %v2624_v60, 0.0 }
 0x19c   :  { %v2854_v5 = vadd.f32 %v2853_v59, %v2852_v32  ;;  %v2500_v49 = vmax.f32 %v1594_v33, 0.0  ;;  %v3125_v27 = vsel %vm2663_vm2, %v2623_v18, 0.0  ;;  %v2219_v9 = vadd.f32 %v5626_v38, %v2218_v14 }
 0x19d   :  { %v2499_v26 = vmax.f32 %v1589_v39, 0.0  ;;  %v4015_v19 = vpop.f32.mrb[94].mxu0  ;;  %v3126_v53 = vadd.f32 %v3125_v27, %v3124_v51  ;;  %v4210_v7 = vpop.f32.mrb[94].mxu1  ;;  %v2626_v44 = vmax.f32 %v2224_v52, 0.0  ;;  %v2234_v14 = vadd.f32 %v5626_v38, %v4204_v41 }
 0x19e   :  { %v2859_v0 = vsel %vm2663_vm2, %v2500_v49, 0.0  ;;  %v2856_v43 = vadd.f32 %v2855_v23, %v2854_v5  ;;  %v1604_v10 = vadd.f32 %v5626_v38, %v4015_v19  ;;  %v1598_v35 = vpop.f32.mrb[95].mxu0  ;;  %v2625_v32 = vmax.f32 %v2219_v9, 0.0  ;;  %v2248_v33 = vpop.f32.mrb[95].mxu1 }
 0x19f   :  { %v2857_v3 = vsel %vm2663_vm2, %v2499_v26, 0.0  ;;  %v1599_v57 = vadd.f32 %v5626_v38, %v1598_v35  ;;  %v3128_v59 = vadd.f32 %v3127_v1, %v3126_v53  ;;  %v3131_v23 = vsel %vm2663_vm2, %v2626_v44, 0.0 }
 0x1a0   :  { %v2858_v46 = vadd.f32 %v2857_v3, %v2856_v43  ;;  %v2502_v31 = vmax.f32 %v1604_v10, 0.0  ;;  %v3129_v18 = vsel %vm2663_vm2, %v2625_v32, 0.0  ;;  %v2229_v5 = vadd.f32 %v5626_v38, %v2228_v62 }
 0x1a1   :  { %v2501_v39 = vmax.f32 %v1599_v57, 0.0  ;;  %v4018_v60 = vpop.f32.mrb[96].mxu0  ;;  %v3130_v19 = vadd.f32 %v3129_v18, %v3128_v59  ;;  %v5803_v27 = vpop.f32.mrb[96].mxu1  ;;  %v2628_v9 = vmax.f32 %v2234_v14, 0.0  ;;  %v2244_v3 = vadd.f32 %v5626_v38, %v4207_v22 }
 0x1a2   :  { %v2863_v49 = vsel %vm2663_vm2, %v2502_v31, 0.0  ;;  %v2860_v51 = vadd.f32 %v2859_v0, %v2858_v46  ;;  %v1614_v52 = vadd.f32 %v5626_v38, %v4018_v60  ;;  %v1608_v26 = vpop.f32.mrb[97].mxu0  ;;  %v2627_v43 = vmax.f32 %v2229_v5, 0.0  ;;  %v5807_v10 = vpop.f32.mrb[97].mxu1 }
 0x1a3   :  { %v2861_v1 = vsel %vm2663_vm2, %v2501_v39, 0.0  ;;  %v1609_v41 = vadd.f32 %v5626_v38, %v1608_v26  ;;  %v3132_v62 = vadd.f32 %v3131_v23, %v3130_v19  ;;  %v3135_v44 = vsel %vm2663_vm2, %v2628_v9, 0.0 }
 0x1a4   :  { %v2862_v35 = vadd.f32 %v2861_v1, %v2860_v51  ;;  %v2504_v53 = vmax.f32 %v1614_v52, 0.0  ;;  %v3133_v32 = vsel %vm2663_vm2, %v2627_v43, 0.0  ;;  %v2239_v46 = vadd.f32 %v5626_v38, %v2238_v28 }
 0x1a5   :  { %v2503_v0 = vmax.f32 %v1609_v41, 0.0  ;;  %v4021_v57 = vpop.f32.mrb[98].mxu0  ;;  %v3134_v60 = vadd.f32 %v3133_v32, %v3132_v62  ;;  %v5815_v18 = vpop.f32.mrb[98].mxu1  ;;  %v2630_v5 = vmax.f32 %v2244_v3, 0.0 }
 0x1a6   :  { %v2864_v31 = vadd.f32 %v2863_v49, %v2862_v35  ;;  %v2872_v59 = vsel %vm2663_vm2, %v2504_v53, 0.0  ;;  %v1624_v14 = vadd.f32 %v5626_v38, %v4021_v57  ;;  %v1618_v39 = vpop.f32.mrb[99].mxu0  ;;  %v2629_v51 = vmax.f32 %v2239_v46, 0.0  ;;  %v5819_v52 = vpop.f32.mrb[99].mxu1 }
 0x1a7   :  { %v2871_v23 = vsel %vm2663_vm2, %v2503_v0, 0.0  ;;  %v1619_v22 = vadd.f32 %v5626_v38, %v1618_v39  ;;  %v3136_v49 = vadd.f32 %v3135_v44, %v3134_v60  ;;  %v3139_v9 = vsel %vm2663_vm2, %v2630_v5, 0.0 }
 0x1a8   :  { %v2865_v26 = vrot.slane %v2864_v31, 4  ;;  %v2873_v19 = vadd.f32 %v2872_v59, %v2871_v23  ;;  %v2506_v28 = vmax.f32 %v1624_v14, 0.0  ;;  %v3137_v43 = vsel %vm2663_vm2, %v2629_v51, 0.0 }
 0x1a9   :  { %v2505_v1 = vmax.f32 %v1619_v22, 0.0  ;;  %v4024_v41 = vpop.f32.mrb[100].mxu0  ;;  %v2254_v35 = vadd.f32 %v5626_v38, %v4210_v7  ;;  %v2538_v53 = vmax.f32 %v5554_v16, 0.0  ;;  %v3138_v57 = vadd.f32 %v3137_v43, %v3136_v49  ;;  %v5826_v32 = vpop.f32.mrb[100].mxu1 }
 0x1aa   :  { %v2866_v62 = vadd.f32 %v2865_v26, %v2864_v31  ;;  %v1634_v3 = vadd.f32 %v5626_v38, %v4024_v41  ;;  %v1628_v0 = vpop.f32.mrb[101].mxu0  ;;  %v2249_v14 = vadd.f32 %v5626_v38, %v2248_v33  ;;  %v5831_v39 = vpop.f32.mrb[101].mxu1  ;;  %v2876_v7 = vsel %vm2663_vm2, %v2506_v28, 0.0 }
 0x1ab   :  { %v2874_v46 = vsel %vm2663_vm2, %v2505_v1, 0.0  ;;  %v1629_v44 = vadd.f32 %v5626_v38, %v1628_v0  ;;  %v2632_v59 = vmax.f32 %v2254_v35, 0.0  ;;  %v5834_v31 = vadd.f32 %v3139_v9, %v3138_v57 }
 0x1ac   :  { %v2867_v60 = vrot.slane %v2866_v62, 2  ;;  %v2875_v16 = vadd.f32 %v2874_v46, %v2873_v19  ;;  %v2508_v23 = vmax.f32 %v1634_v3, 0.0  ;;  %v2631_v26 = vmax.f32 %v2249_v14, 0.0 }
 0x1ad   :  { %6176 = vst [vmem:[#allocation7_spill] sm:$0xff] %v5834_v31  ;;  %v2507_v22 = vmax.f32 %v1629_v44, 0.0  ;;  %v4027_v5 = vpop.f32.mrb[102].mxu0  ;;  %v3148_v51 = vsel %vm2663_vm2, %v2632_v59, 0.0  ;;  %v2537_v49 = vmax.f32 %v5681_v47, 0.0  ;;  %v5839_v35 = vpop.f32.mrb[102].mxu1  ;;  %v2264_v3 = vadd.f32 %v5626_v38, %v5803_v27 }
 0x1ae   :  { %v2868_v1 = vadd.f32 %v2867_v60, %v2866_v62  ;;  %v2877_v41 = vadd.f32 %v2876_v7, %v2875_v16  ;;  %v1644_v33 = vadd.f32 %v5626_v38, %v4027_v5  ;;  %v1638_v43 = vpop.f32.mrb[103].mxu0  ;;  %v3147_v9 = vsel %vm2663_vm2, %v2631_v26, 0.0  ;;  %v5846_v0 = vpop.f32.mrb[103].mxu1 }
 0x1af   :  { %v2878_v28 = vsel %vm2663_vm2, %v2507_v22, 0.0  ;;  %v1639_v19 = vadd.f32 %v5626_v38, %v1638_v43  ;;  %v3149_v46 = vadd.f32 %v3148_v51, %v3147_v9  ;;  %v5849_v44 = vsel %vm2663_vm2, %v2538_v53, 0.0 }
 0x1b0   :  { %v2869_v57 = vrot.slane %v2868_v1, 1  ;;  %v2879_v47 = vadd.f32 %v2878_v28, %v2877_v41  ;;  %v2510_v62 = vmax.f32 %v1644_v33, 0.0  ;;  %v2880_v59 = vsel %vm2663_vm2, %v2508_v23, 0.0 }
 0x1b1   :  { %v2509_v14 = vmax.f32 %v1639_v19, 0.0  ;;  %v4030_v60 = vpop.f32.mrb[104].mxu0  ;;  %v5854_v7 = vadd.f32 %v5626_v38, %v5270_v54  ;;  %v5857_v26 = vpop.f32.mrb[104].mxu1  ;;  %v5860_v51 = vsel %vm2663_vm2, %v2537_v49, 0.0  ;;  %v2634_v41 = vmax.f32 %v2264_v3, 0.0 }
 0x1b2   :  { %v2870_v16 = vadd.f32 %v2869_v57, %v2868_v1  ;;  %v2881_v27 = vadd.f32 %v2880_v59, %v2879_v47  ;;  %v1654_v22 = vadd.f32 %v5626_v38, %v4030_v60  ;;  %v1648_v5 = vpop.f32.mrb[105].mxu0  ;;  %v5864_v33 = vpop.f32.mrb[105].mxu1  ;;  %v2884_v1 = vsel %vm2663_vm2, %v2510_v62, 0.0 }
 0x1b3   :  { %v2882_v53 = vsel %vm2663_vm2, %v2509_v14, 0.0  ;;  %v1649_v23 = vadd.f32 %v5626_v38, %v1648_v5  ;;  %v2259_v28 = vadd.f32 %v5626_v38, %v5807_v10  ;;  %v2274_v57 = vadd.f32 %v5626_v38, %v5815_v18 }
 0x1b4   :  { %v5867_v54 = vsel %vm3237_vm4, %v2870_v16, %v5702_v13  ;;  %v2883_v43 = vadd.f32 %v2882_v53, %v2881_v27  ;;  %v2512_v19 = vmax.f32 %v1654_v22, 0.0  ;;  %v2269_v3 = vadd.f32 %v5626_v38, %v5819_v52 }
 0x1b5   :  { %v2511_v9 = vmax.f32 %v1649_v23, 0.0  ;;  %v4033_v49 = vpop.f32.mrb[106].mxu0  ;;  %v5878_v47 = vadd.f32 %v5626_v38, %v5279_v58  ;;  %v2633_v14 = vmax.f32 %v2259_v28, 0.0  ;;  %v5881_v60 = vpop.f32.mrb[106].mxu1  ;;  %v3152_v18 = vsel %vm2663_vm2, %v2634_v41, 0.0 }
 0x1b6   :  { %v2885_v13 = vadd.f32 %v2884_v1, %v2883_v43  ;;  %v1664_v62 = vadd.f32 %v5626_v38, %v4033_v49  ;;  %v1658_v59 = vpop.f32.mrb[107].mxu0  ;;  %v2636_v27 = vmax.f32 %v2274_v57, 0.0  ;;  %v5886_v22 = vpop.f32.mrb[107].mxu1  ;;  %v2635_v53 = vmax.f32 %v2269_v3, 0.0  ;;  %v5895_v41 = vld [vmem:[%s6168_s2] ss:$0 sm:$0xff] }
 0x1b7   :  { %v2886_v10 = vsel %vm2663_vm2, %v2511_v9, 0.0  ;;  %v1659_v16 = vadd.f32 %v5626_v38, %v1658_v59  ;;  %v3150_v58 = vsel %vm2663_vm2, %v2633_v14, 0.0  ;;  %v2888_v23 = vsel %vm2663_vm2, %v2512_v19, 0.0 }
 0x1b8   :  { %v2887_v52 = vadd.f32 %v2886_v10, %v2885_v13  ;;  %v2514_v5 = vmax.f32 %v1664_v62, 0.0  ;;  %v3151_v28 = vadd.f32 %v3150_v58, %v3149_v46  ;;  %v3156_v49 = vsel %vm2663_vm2, %v2636_v27, 0.0 }
 0x1b9   :  { %v2513_v1 = vmax.f32 %v1659_v16, 0.0  ;;  %v4036_v43 = vpop.f32.mrb[108].mxu0  ;;  %v3154_v3 = vsel %vm2663_vm2, %v2635_v53, 0.0  ;;  %v5899_v62 = vpop.f32.mrb[108].mxu1  ;;  %v2284_v14 = vadd.f32 %v5895_v41, %v5826_v32  ;;  %v2304_v31 = vadd.f32 %v5895_v41, %v5857_v26 }
 0x1ba   :  { %v2892_v9 = vsel %vm2663_vm2, %v2514_v5, 0.0  ;;  %v2889_v38 = vadd.f32 %v2888_v23, %v2887_v52  ;;  %v1674_v57 = vadd.f32 %v5895_v41, %v4036_v43  ;;  %v1668_v13 = vpop.f32.mrb[109].mxu0  ;;  %v3153_v59 = vadd.f32 %v3152_v18, %v3151_v28  ;;  %v5905_v10 = vpop.f32.mrb[109].mxu1 }
 0x1bb   :  { %v2890_v19 = vsel %vm2663_vm2, %v2513_v1, 0.0  ;;  %v1669_v46 = vadd.f32 %v5895_v41, %v1668_v13  ;;  %v2279_v52 = vadd.f32 %v5895_v41, %v5831_v39  ;;  %v2294_v5 = vadd.f32 %v5895_v41, %v5839_v35 }
 0x1bc   :  { %v2891_v16 = vadd.f32 %v2890_v19, %v2889_v38  ;;  %v2516_v27 = vmax.f32 %v1674_v57, 0.0  ;;  %v3155_v23 = vadd.f32 %v3154_v3, %v3153_v59  ;;  %v2638_v1 = vmax.f32 %v2284_v14, 0.0 }
 0x1bd   :  { %v2515_v58 = vmax.f32 %v1669_v46, 0.0  ;;  %v4039_v53 = vpop.f32.mrb[110].mxu0  ;;  %v2289_v18 = vadd.f32 %v5895_v41, %v5846_v0  ;;  %v2637_v57 = vmax.f32 %v2279_v52, 0.0  ;;  %v5915_v13 = vpop.f32.mrb[110].mxu1 }
 0x1be   :  { %v2896_v43 = vsel %vm2663_vm2, %v2516_v27, 0.0  ;;  %v2893_v32 = vadd.f32 %v2892_v9, %v2891_v16  ;;  %v1684_v28 = vadd.f32 %v5895_v41, %v4039_v53  ;;  %v1678_v38 = vpop.f32.mrb[111].mxu0  ;;  %v3160_v19 = vsel %vm2663_vm2, %v2638_v1, 0.0  ;;  %v5920_v46 = vpop.f32.mrb[111].mxu1 }
 0x1bf   :  { %v2894_v39 = vsel %vm2663_vm2, %v2515_v58, 0.0  ;;  %v1679_v35 = vadd.f32 %v5895_v41, %v1678_v38  ;;  %v3157_v3 = vadd.f32 %v3156_v49, %v3155_v23  ;;  %v3158_v14 = vsel %vm2663_vm2, %v2637_v57, 0.0 }
 0x1c0   :  { %v2895_v59 = vadd.f32 %v2894_v39, %v2893_v32  ;;  %v2518_v0 = vmax.f32 %v1684_v28, 0.0  ;;  %v2640_v9 = vmax.f32 %v2294_v5, 0.0  ;;  %v2639_v52 = vmax.f32 %v2289_v18, 0.0 }
 0x1c1   :  { %v2517_v16 = vmax.f32 %v1679_v35, 0.0  ;;  %v4042_v27 = vpop.f32.mrb[112].mxu0  ;;  %v3159_v53 = vadd.f32 %v3158_v14, %v3157_v3  ;;  %v5928_v32 = vpop.f32.mrb[112].mxu1  ;;  %v2642_v3 = vmax.f32 %v2304_v31, 0.0 }
 0x1c2   :  { %v2900_v58 = vsel %vm2663_vm2, %v2518_v0, 0.0  ;;  %v2897_v38 = vadd.f32 %v2896_v43, %v2895_v59  ;;  %v1694_v1 = vadd.f32 %v5895_v41, %v4042_v27  ;;  %v1688_v49 = vpop.f32.mrb[113].mxu0  ;;  %v3164_v23 = vsel %vm2663_vm2, %v2640_v9, 0.0  ;;  %v5933_v39 = vpop.f32.mrb[113].mxu1 }
 0x1c3   :  { %v2898_v28 = vsel %vm2663_vm2, %v2517_v16, 0.0  ;;  %v1689_v5 = vadd.f32 %v5895_v41, %v1688_v49  ;;  %v3161_v57 = vadd.f32 %v3160_v19, %v3159_v53  ;;  %v3162_v18 = vsel %vm2663_vm2, %v2639_v52, 0.0 }
 0x1c4   :  { %v2899_v26 = vadd.f32 %v2898_v28, %v2897_v38  ;;  %v2520_v35 = vmax.f32 %v1694_v1, 0.0  ;;  %v2299_v43 = vadd.f32 %v5895_v41, %v5864_v33  ;;  %v2314_v9 = vadd.f32 %v5895_v41, %v5881_v60 }
 0x1c5   :  { %v2519_v59 = vmax.f32 %v1689_v5, 0.0  ;;  %v4045_v0 = vpop.f32.mrb[114].mxu0  ;;  %v3163_v14 = vadd.f32 %v3162_v18, %v3161_v57  ;;  %v2309_v16 = vadd.f32 %v5895_v41, %v5886_v22  ;;  %v3168_v31 = vsel %vm2663_vm2, %v2642_v3, 0.0  ;;  %v5944_v38 = vpop.f32.mrb[114].mxu1 }
 0x1c6   :  { %v2904_v19 = vsel %vm2663_vm2, %v2520_v35, 0.0  ;;  %v2901_v27 = vadd.f32 %v2900_v58, %v2899_v26  ;;  %v1704_v53 = vadd.f32 %v5895_v41, %v4045_v0  ;;  %v1698_v52 = vpop.f32.mrb[115].mxu0  ;;  %v2641_v49 = vmax.f32 %v2299_v43, 0.0  ;;  %v5948_v60 = vpop.f32.mrb[115].mxu1 }
 0x1c7   :  { %v2902_v33 = vsel %vm2663_vm2, %v2519_v59, 0.0  ;;  %v1699_v1 = vadd.f32 %v5895_v41, %v1698_v52  ;;  %v3165_v28 = vadd.f32 %v3164_v23, %v3163_v14  ;;  %v2644_v57 = vmax.f32 %v2314_v9, 0.0 }
 0x1c8   :  { %v2903_v5 = vadd.f32 %v2902_v33, %v2901_v27  ;;  %v2522_v22 = vmax.f32 %v1704_v53, 0.0  ;;  %v2643_v18 = vmax.f32 %v2309_v16, 0.0  ;;  %v3166_v35 = vsel %vm2663_vm2, %v2641_v49, 0.0 }
 0x1c9   :  { %v2521_v58 = vmax.f32 %v1699_v1, 0.0  ;;  %v4048_v26 = vpop.f32.mrb[116].mxu0  ;;  %v2324_v3 = vadd.f32 %v5895_v41, %v5899_v62  ;;  %v2319_v59 = vadd.f32 %v5895_v41, %v5905_v10  ;;  %v3167_v27 = vadd.f32 %v3166_v35, %v3165_v28  ;;  %v5957_v53 = vpop.f32.mrb[116].mxu1 }
 0x1ca   :  { %v2908_v0 = vsel %vm2663_vm2, %v2522_v22, 0.0  ;;  %v2905_v43 = vadd.f32 %v2904_v19, %v2903_v5  ;;  %v1714_v23 = vadd.f32 %v5895_v41, %v4048_v26  ;;  %v1708_v14 = vpop.f32.mrb[117].mxu0  ;;  %v3172_v52 = vsel %vm2663_vm2, %v2644_v57, 0.0  ;;  %v5963_v33 = vpop.f32.mrb[117].mxu1 }
 0x1cb   :  { %v2906_v9 = vsel %vm2663_vm2, %v2521_v58, 0.0  ;;  %v1709_v16 = vadd.f32 %v5895_v41, %v1708_v14  ;;  %v3170_v62 = vsel %vm2663_vm2, %v2643_v18, 0.0  ;;  %v3169_v49 = vadd.f32 %v3168_v31, %v3167_v27 }
 0x1cc   :  { %v2907_v10 = vadd.f32 %v2906_v9, %v2905_v43  ;;  %v2524_v1 = vmax.f32 %v1714_v23, 0.0  ;;  %v2646_v19 = vmax.f32 %v2324_v3, 0.0  ;;  %v2645_v26 = vmax.f32 %v2319_v59, 0.0 }
 0x1cd   :  { %v2523_v5 = vmax.f32 %v1709_v16, 0.0  ;;  %v4051_v22 = vpop.f32.mrb[118].mxu0  ;;  %v2334_v28 = vadd.f32 %v5895_v41, %v5915_v13  ;;  %v2329_v58 = vadd.f32 %v5895_v41, %v5920_v46  ;;  %v3171_v36 = vadd.f32 %v3170_v62, %v3169_v49  ;;  %v5971_v43 = vpop.f32.mrb[118].mxu1 }
 0x1ce   :  { %v2912_v35 = vsel %vm2663_vm2, %v2524_v1, 0.0  ;;  %v2909_v57 = vadd.f32 %v2908_v0, %v2907_v10  ;;  %v1724_v18 = vadd.f32 %v5895_v41, %v4051_v22  ;;  %v1718_v14 = vpop.f32.mrb[119].mxu0  ;;  %v3176_v59 = vsel %vm2663_vm2, %v2646_v19, 0.0  ;;  %v5977_v23 = vpop.f32.mrb[119].mxu1 }
 0x1cf   :  { %v2910_v31 = vsel %vm2663_vm2, %v2523_v5, 0.0  ;;  %v1719_v3 = vadd.f32 %v5895_v41, %v1718_v14  ;;  %v3174_v13 = vsel %vm2663_vm2, %v2645_v26, 0.0  ;;  %v3173_v9 = vadd.f32 %v3172_v52, %v3171_v36 }
 0x1d0   :  { %v2911_v46 = vadd.f32 %v2910_v31, %v2909_v57  ;;  %v2526_v27 = vmax.f32 %v1724_v18, 0.0  ;;  %v2648_v0 = vmax.f32 %v2334_v28, 0.0  ;;  %v2647_v1 = vmax.f32 %v2329_v58, 0.0 }
 0x1d1   :  { %v2525_v16 = vmax.f32 %v1719_v3, 0.0  ;;  %v4054_v10 = vpop.f32.mrb[120].mxu0  ;;  %v2344_v62 = vadd.f32 %v5895_v41, %v5928_v32  ;;  %v2339_v49 = vadd.f32 %v5895_v41, %v5933_v39  ;;  %v3175_v14 = vadd.f32 %v3174_v13, %v3173_v9  ;;  %v5985_v57 = vpop.f32.mrb[120].mxu1 }
 0x1d2   :  { %v2916_v5 = vsel %vm2663_vm2, %v2526_v27, 0.0  ;;  %v2913_v19 = vadd.f32 %v2912_v35, %v2911_v46  ;;  %v1734_v22 = vadd.f32 %v5895_v41, %v4054_v10  ;;  %v1728_v26 = vpop.f32.mrb[121].mxu0  ;;  %v3180_v28 = vsel %vm2663_vm2, %v2648_v0, 0.0  ;;  %v5991_v58 = vpop.f32.mrb[121].mxu1 }
 0x1d3   :  { %v2914_v36 = vsel %vm2663_vm2, %v2525_v16, 0.0  ;;  %v1729_v52 = vadd.f32 %v5895_v41, %v1728_v26  ;;  %v3178_v32 = vsel %vm2663_vm2, %v2647_v1, 0.0  ;;  %v3177_v31 = vadd.f32 %v3176_v59, %v3175_v14 }
 0x1d4   :  { %v2915_v39 = vadd.f32 %v2914_v36, %v2913_v19  ;;  %v2528_v18 = vmax.f32 %v1734_v22, 0.0  ;;  %v2650_v35 = vmax.f32 %v2344_v62, 0.0  ;;  %v2649_v27 = vmax.f32 %v2339_v49, 0.0 }
 0x1d5   :  { %v2527_v3 = vmax.f32 %v1729_v52, 0.0  ;;  %v4057_v46 = vpop.f32.mrb[122].mxu0  ;;  %v2354_v13 = vadd.f32 %v5895_v41, %v5944_v38  ;;  %v2349_v9 = vadd.f32 %v5895_v41, %v5948_v60  ;;  %v3179_v26 = vadd.f32 %v3178_v32, %v3177_v31  ;;  %v5999_v19 = vpop.f32.mrb[122].mxu1 }
 0x1d6   :  { %v2920_v16 = vsel %vm2663_vm2, %v2528_v18, 0.0  ;;  %v2917_v0 = vadd.f32 %v2916_v5, %v2915_v39  ;;  %v1744_v10 = vadd.f32 %v5895_v41, %v4057_v46  ;;  %v1738_v1 = vpop.f32.mrb[123].mxu0  ;;  %v3184_v49 = vsel %vm2663_vm2, %v2650_v35, 0.0  ;;  %v6005_v22 = vpop.f32.mrb[123].mxu1 }
 0x1d7   :  { %v2918_v59 = vsel %vm2663_vm2, %v2527_v3, 0.0  ;;  %v1739_v62 = vadd.f32 %v5895_v41, %v1738_v1  ;;  %v3182_v38 = vsel %vm2663_vm2, %v2649_v27, 0.0  ;;  %v3181_v36 = vadd.f32 %v3180_v28, %v3179_v26 }
 0x1d8   :  { %v2919_v60 = vadd.f32 %v2918_v59, %v2917_v0  ;;  %v2530_v14 = vmax.f32 %v1744_v10, 0.0  ;;  %v2652_v5 = vmax.f32 %v2354_v13, 0.0  ;;  %v2651_v18 = vmax.f32 %v2349_v9, 0.0 }
 0x1d9   :  { %v2529_v52 = vmax.f32 %v1739_v62, 0.0  ;;  %v4060_v39 = vpop.f32.mrb[124].mxu0  ;;  %v2364_v32 = vadd.f32 %v5895_v41, %v5957_v53  ;;  %v2359_v31 = vadd.f32 %v5895_v41, %v5963_v33  ;;  %v3183_v1 = vadd.f32 %v3182_v38, %v3181_v36  ;;  %v6013_v0 = vpop.f32.mrb[124].mxu1 }
 0x1da   :  { %v2924_v3 = vsel %vm2663_vm2, %v2530_v14, 0.0  ;;  %v2921_v35 = vadd.f32 %v2920_v16, %v2919_v60  ;;  %v1754_v46 = vadd.f32 %v5895_v41, %v4060_v39  ;;  %v1748_v27 = vpop.f32.mrb[125].mxu0  ;;  %v3188_v9 = vsel %vm2663_vm2, %v2652_v5, 0.0  ;;  %v2398_v10 = vpop.f32.mrb[125].mxu1 }
 0x1db   :  { %v2922_v28 = vsel %vm2663_vm2, %v2529_v52, 0.0  ;;  %v1749_v13 = vadd.f32 %v5895_v41, %v1748_v27  ;;  %v3186_v53 = vsel %vm2663_vm2, %v2651_v18, 0.0  ;;  %v3185_v59 = vadd.f32 %v3184_v49, %v3183_v1 }
 0x1dc   :  { %v2923_v26 = vadd.f32 %v2922_v28, %v2921_v35  ;;  %v2532_v33 = vmax.f32 %v1754_v46, 0.0  ;;  %v2654_v62 = vmax.f32 %v2364_v32, 0.0  ;;  %v2653_v14 = vmax.f32 %v2359_v31, 0.0 }
 0x1dd   :  { %v2531_v16 = vmax.f32 %v1749_v13, 0.0  ;;  %v4063_v60 = vpop.f32.mrb[126].mxu0  ;;  %v2374_v38 = vadd.f32 %v5895_v41, %v5971_v43  ;;  %v2369_v36 = vadd.f32 %v5895_v41, %v5977_v23  ;;  %v3187_v27 = vadd.f32 %v3186_v53, %v3185_v59 }
 0x1de   :  { %v2928_v52 = vsel %vm2663_vm2, %v2532_v33, 0.0  ;;  %v2925_v39 = vadd.f32 %v2924_v3, %v2923_v26  ;;  %v1764_v5 = vadd.f32 %v5895_v41, %v4063_v60  ;;  %v1758_v18 = vpop.f32.mrb[127].mxu0  ;;  %v3192_v32 = vsel %vm2663_vm2, %v2654_v62, 0.0 }
 0x1df   :  { %v2926_v35 = vsel %vm2663_vm2, %v2531_v16, 0.0  ;;  %v1759_v49 = vadd.f32 %v5895_v41, %v1758_v18  ;;  %v3190_v31 = vsel %vm2663_vm2, %v2653_v14, 0.0  ;;  %v3189_v1 = vadd.f32 %v3188_v9, %v3187_v27 }
 0x1e0   :  { %v2927_v46 = vadd.f32 %v2926_v35, %v2925_v39  ;;  %v2534_v43 = vmax.f32 %v1764_v5, 0.0  ;;  %v2656_v28 = vmax.f32 %v2374_v38, 0.0  ;;  %v2655_v33 = vmax.f32 %v2369_v36, 0.0 }
 0x1e1   :  { %v2533_v23 = vmax.f32 %v1759_v49, 0.0  ;;  %v4066_v13 = vpop.f32.mrb[128].mxu0  ;;  %v2384_v3 = vadd.f32 %v5895_v41, %v5985_v57  ;;  %v2379_v53 = vadd.f32 %v5895_v41, %v5991_v58  ;;  %v3191_v60 = vadd.f32 %v3190_v31, %v3189_v1 }
 0x1e2   :  { %v2932_v26 = vsel %vm2663_vm2, %v2534_v43, 0.0  ;;  %v2929_v59 = vadd.f32 %v2928_v52, %v2927_v46  ;;  %v1774_v62 = vadd.f32 %v5895_v41, %v4066_v13  ;;  %v1768_v16 = vpop.f32.mrb[129].mxu0  ;;  %v3196_v38 = vsel %vm2663_vm2, %v2656_v28, 0.0 }
 0x1e3   :  { %v2930_v14 = vsel %vm2663_vm2, %v2533_v23, 0.0  ;;  %v1769_v9 = vadd.f32 %v5895_v41, %v1768_v16  ;;  %v3194_v36 = vsel %vm2663_vm2, %v2655_v33, 0.0  ;;  %v3193_v5 = vadd.f32 %v3192_v32, %v3191_v60 }
 0x1e4   :  { %v2931_v39 = vadd.f32 %v2930_v14, %v2929_v59  ;;  %v2536_v57 = vmax.f32 %v1774_v62, 0.0  ;;  %v2658_v18 = vmax.f32 %v2384_v3, 0.0  ;;  %v2657_v27 = vmax.f32 %v2379_v53, 0.0 }
 0x1e5   :  { %v2535_v58 = vmax.f32 %v1769_v9, 0.0  ;;  %v2394_v52 = vadd.f32 %v5895_v41, %v5999_v19  ;;  %v2389_v35 = vadd.f32 %v5895_v41, %v6005_v22  ;;  %v2539_v49 = vmax.f32 %v5878_v47, 0.0 }
 0x1e6   :  { %v2933_v31 = vadd.f32 %v2932_v26, %v2931_v39  ;;  %v2941_v46 = vsel %vm2663_vm2, %v2536_v57, 0.0  ;;  %v3195_v43 = vadd.f32 %v3194_v36, %v3193_v5  ;;  %v1799_v1 = vadd.f32 %v5895_v41, %v5302_v8 }
 0x1e7   :  { %v2940_v32 = vsel %vm2663_vm2, %v2535_v58, 0.0  ;;  %v3198_v28 = vsel %vm2663_vm2, %v2657_v27, 0.0  ;;  %v2659_v23 = vmax.f32 %v2389_v35, 0.0  ;;  %v3200_v19 = vsel %vm2663_vm2, %v2658_v18, 0.0 }
 0x1e8   :  { %v2934_v13 = vrot.slane %v2933_v31, 4  ;;  %v2942_v33 = vadd.f32 %v2941_v46, %v2940_v32  ;;  %v3197_v3 = vadd.f32 %v3196_v38, %v3195_v43  ;;  %v2660_v22 = vmax.f32 %v2394_v52, 0.0 }
 0x1e9   :  { %v2404_v47 = vadd.f32 %v5895_v41, %v6013_v0  ;;  %v2399_v53 = vadd.f32 %v5895_v41, %v2398_v10  ;;  %v2540_v26 = vmax.f32 %v5854_v7, 0.0  ;;  %v1804_v16 = vadd.f32 %v5895_v41, %v5293_v4 }
 0x1ea   :  { %v2935_v59 = vadd.f32 %v2934_v13, %v2933_v31  ;;  %v2944_v8 = vadd.f32 %v5860_v51, %v2942_v33  ;;  %v3199_v62 = vadd.f32 %v3198_v28, %v3197_v3  ;;  %v3202_v60 = vsel %vm2663_vm2, %v2659_v23, 0.0 }
 0x1eb   :  { %v2661_v14 = vmax.f32 %v2399_v53, 0.0  ;;  %v2541_v9 = vmax.f32 %v1799_v1, 0.0  ;;  %v4319_v0 = vmov 0.0   ;;  %v2947_v7 = vsel %vm2663_vm2, %v2539_v49, 0.0 }
 0x1ec   :  { %v2936_v38 = vrot.slane %v2935_v59, 2  ;;  %v2946_v36 = vadd.f32 %v5849_v44, %v2944_v8  ;;  %v3201_v39 = vadd.f32 %v3200_v19, %v3199_v62  ;;  %4264 = vmatprep.mubr.msk.f32.mxu1 %vm4318_vm5, %v4319_v0  ;;  %v1809_v51 = vadd.f32 %v5895_v41, %v5326_v24 }
 0x1ed   :  { %v3204_v10 = vsel %vm2663_vm2, %v2660_v22, 0.0  ;;  %v2662_v57 = vmax.f32 %v2404_v47, 0.0  ;;  %v2949_v58 = vsel %vm2663_vm2, %v2540_v26, 0.0  ;;  %v2542_v27 = vmax.f32 %v1804_v16, 0.0 }
 0x1ee   :  { %v2937_v4 = vadd.f32 %v2936_v38, %v2935_v59  ;;  %v2948_v5 = vadd.f32 %v2947_v7, %v2946_v36  ;;  %v3203_v18 = vadd.f32 %v3202_v60, %v3201_v39  ;;  %v1814_v44 = vadd.f32 %v5895_v41, %v5317_v20 }
 0x1ef   :  { %v3206_v52 = vsel %vm2663_vm2, %v2661_v14, 0.0  ;;  %v2951_v35 = vsel %vm2663_vm2, %v2541_v9, 0.0  ;;  %v2543_v24 = vmax.f32 %v1809_v51, 0.0  ;;  %v1819_v43 = vadd.f32 %v5895_v41, %v5350_v42 }
 0x1f0   :  { %v2938_v49 = vrot.slane %v2937_v4, 1  ;;  %v2950_v31 = vadd.f32 %v2949_v58, %v2948_v5  ;;  %v3205_v46 = vadd.f32 %v3204_v10, %v3203_v18  ;;  %v3208_v1 = vsel %vm2663_vm2, %v2662_v57, 0.0 }
 0x1f1   :  { %v2953_v13 = vsel %vm2663_vm2, %v2542_v27, 0.0  ;;  %v2544_v20 = vmax.f32 %v1814_v44, 0.0  ;;  %v1824_v33 = vadd.f32 %v5895_v41, %v5341_v37  ;;  %v2955_v42 = vsel %vm2663_vm2, %v2543_v24, 0.0 }
 0x1f2   :  { %v2939_v32 = vadd.f32 %v2938_v49, %v2937_v4  ;;  %v2952_v28 = vadd.f32 %v2951_v35, %v2950_v31  ;;  %v3207_v23 = vadd.f32 %v3206_v52, %v3205_v46  ;;  %v2545_v47 = vmax.f32 %v1819_v43, 0.0 }
 0x1f3   :  { %v1829_v53 = vadd.f32 %v5895_v41, %v5374_v61  ;;  %v2957_v59 = vsel %vm2663_vm2, %v2544_v20, 0.0  ;;  %v2546_v8 = vmax.f32 %v1824_v33, 0.0  ;;  %v1834_v62 = vadd.f32 %v5895_v41, %v5365_v56 }
 0x1f4   :  { %v6075_v19 = vsel %vm3239_vm6, %v2939_v32, %v5867_v54  ;;  %v2954_v3 = vadd.f32 %v2953_v13, %v2952_v28  ;;  %v6077_v22 = vadd.f32 %v3208_v1, %v3207_v23  ;;  %v2959_v54 = vsel %vm2663_vm2, %v2545_v47, 0.0 }
 0x1f5   :  { %v2547_v16 = vmax.f32 %v1829_v53, 0.0  ;;  %v1839_v60 = vadd.f32 %v5895_v41, %v5398_v15  ;;  %v2961_v9 = vsel %vm2663_vm2, %v2546_v8, 0.0  ;;  %v2548_v38 = vmax.f32 %v1834_v62, 0.0 }
 0x1f6   :  { %v2956_v26 = vadd.f32 %v2955_v42, %v2954_v3  ;;  %v1844_v61 = vadd.f32 %v5895_v41, %v5389_v11  ;;  %v1849_v56 = vadd.f32 %v5895_v41, %v5422_v34  ;;  %v1854_v15 = vadd.f32 %v5895_v41, %v5413_v29 }
 0x1f7   :  { %v2963_v39 = vsel %vm2663_vm2, %v2547_v16, 0.0  ;;  %v2549_v0 = vmax.f32 %v1839_v60, 0.0  ;;  %v2965_v51 = vsel %vm2663_vm2, %v2548_v38, 0.0  ;;  %v1859_v11 = vadd.f32 %v5895_v41, %v5446_v55 }
 0x1f8   :  { %v2958_v37 = vadd.f32 %v2957_v59, %v2956_v26  ;;  %v2550_v10 = vmax.f32 %v1844_v61, 0.0  ;;  %v2551_v5 = vmax.f32 %v1849_v56, 0.0  ;;  %v2552_v27 = vmax.f32 %v1854_v15, 0.0 }
 0x1f9   :  { %v2967_v4 = vsel %vm2663_vm2, %v2549_v0, 0.0  ;;  %v1864_v34 = vadd.f32 %v5895_v41, %v5437_v50  ;;  %v2553_v35 = vmax.f32 %v1859_v11, 0.0  ;;  %v1869_v29 = vadd.f32 %v5895_v41, %v5467_v12 }
 0x1fa   :  { %v2960_v14 = vadd.f32 %v2959_v54, %v2958_v37  ;;  %v2969_v58 = vsel %vm2663_vm2, %v2550_v10, 0.0  ;;  %v2971_v52 = vsel %vm2663_vm2, %v2551_v5, 0.0  ;;  %v2973_v31 = vsel %vm2663_vm2, %v2552_v27, 0.0  ;;  %v6179_v5 = vld [vmem:[#allocation7_spill] sm:$0xff] }
 0x1fb   :  { %v2554_v46 = vmax.f32 %v1864_v34, 0.0  ;;  %v1874_v55 = vadd.f32 %v5895_v41, %v5458_v6  ;;  %v2975_v43 = vsel %vm2663_vm2, %v2553_v35, 0.0  ;;  %v2555_v1 = vmax.f32 %v1869_v29, 0.0 }
 0x1fc   :  { %v2962_v36 = vadd.f32 %v2961_v9, %v2960_v14  ;;  %v1879_v50 = vadd.f32 %v5895_v41, %v5483_v30  ;;  %v1884_v12 = vadd.f32 %v5895_v41, %v5475_v25  ;;  %v1889_v6 = vadd.f32 %v5895_v41, %v5492_v48 }
 0x1fd   :  { %v2977_v28 = vsel %vm2663_vm2, %v2554_v46, 0.0  ;;  %v2556_v23 = vmax.f32 %v1874_v55, 0.0  ;;  %v2979_v20 = vsel %vm2663_vm2, %v2555_v1, 0.0  ;;  %v1894_v30 = vadd.f32 %v5895_v41, %v5488_v45 }
 0x1fe   :  { %v2964_v7 = vadd.f32 %v2963_v39, %v2962_v36  ;;  %v2557_v33 = vmax.f32 %v1879_v50, 0.0  ;;  %v2558_v47 = vmax.f32 %v1884_v12, 0.0  ;;  %v2559_v59 = vmax.f32 %v1889_v6, 0.0 }
 0x1ff   :  { %v2981_v42 = vsel %vm2663_vm2, %v2556_v23, 0.0  ;;  %v1899_v25 = vadd.f32 %v5895_v41, %v5500_v2  ;;  %v2560_v37 = vmax.f32 %v1894_v30, 0.0  ;;  %v1904_v48 = vadd.f32 %v5895_v41, %v5496_v63 }
 0x200   :  { %v2966_v57 = vadd.f32 %v2965_v51, %v2964_v7  ;;  %v2983_v26 = vsel %vm2663_vm2, %v2557_v33, 0.0  ;;  %v2985_v62 = vsel %vm2663_vm2, %v2558_v47, 0.0  ;;  %v2987_v16 = vsel %vm2663_vm2, %v2559_v59, 0.0  ;;  %v6177_v51 = vld [vmem:[#allocation5_spill] sm:$0xff] }
 0x201   :  { %v2561_v60 = vmax.f32 %v1899_v25, 0.0  ;;  %v1909_v45 = vadd.f32 %v5895_v41, %v5508_v21  ;;  %v2989_v9 = vsel %vm2663_vm2, %v2560_v37, 0.0  ;;  %v2562_v38 = vmax.f32 %v1904_v48, 0.0  ;;  %v3594_v25 = vld [vmem:[%s6170_s4] ss:$0 sm:$0xff] }
 0x202   :  { %v2968_v18 = vadd.f32 %v2967_v4, %v2966_v57  ;;  %v1914_v2 = vadd.f32 %v5895_v41, %v5504_v17  ;;  %v1919_v63 = vadd.f32 %v5895_v41, %v5516_v40  ;;  %v1924_v21 = vadd.f32 %v5895_v41, %v6177_v51  ;;  %v6178_v4 = vld [vmem:[#allocation6_spill] sm:$0xff] }
 0x203   :  { %v2991_v36 = vsel %vm2663_vm2, %v2561_v60, 0.0  ;;  %v2563_v39 = vmax.f32 %v1909_v45, 0.0  ;;  %v2993_v56 = vsel %vm2663_vm2, %v2562_v38, 0.0  ;;  %v3072_v17 = vrot.slane %v6178_v4, 4 }
 0x204   :  { %v2970_v44 = vadd.f32 %v2969_v58, %v2968_v18  ;;  %v2564_v7 = vmax.f32 %v1914_v2, 0.0  ;;  %v2565_v57 = vmax.f32 %v1919_v63, 0.0  ;;  %v3141_v11 = vrot.slane %v6179_v5, 4 }
 0x205   :  { %v2995_v15 = vsel %vm2663_vm2, %v2563_v39, 0.0  ;;  %v2566_v27 = vmax.f32 %v1924_v21, 0.0  ;;  %v3210_v40 = vrot.slane %v6077_v22, 4 }
 0x206   :  { %v2972_v49 = vadd.f32 %v2971_v52, %v2970_v44  ;;  %v2997_v58 = vsel %vm2663_vm2, %v2564_v7, 0.0  ;;  %v2999_v44 = vsel %vm2663_vm2, %v2565_v57, 0.0  ;;  %v3073_v52 = vadd.f32 %v3072_v17, %v6178_v4 }
 0x207   :  { %v3142_v41 = vadd.f32 %v3141_v11, %v6179_v5  ;;  %v3001_v29 = vsel %vm2663_vm2, %v2566_v27, 0.0 }
 0x208   :  { %v2974_v24 = vadd.f32 %v2973_v31, %v2972_v49  ;;  %v3211_v49 = vadd.f32 %v3210_v40, %v6077_v22  ;;  %v3074_v46 = vrot.slane %v3073_v52, 2 }
 0x209   :  { %v3143_v55 = vrot.slane %v3142_v41, 2 }
 0x20a   :  { %v2976_v32 = vadd.f32 %v2975_v43, %v2974_v24  ;;  %v3212_v43 = vrot.slane %v3211_v49, 2  ;;  %v3075_v50 = vadd.f32 %v3074_v46, %v3073_v52 }
 0x20c   :  { %v2978_v13 = vadd.f32 %v2977_v28, %v2976_v32  ;;  %v3144_v32 = vadd.f32 %v3143_v55, %v3142_v41  ;;  %v3213_v23 = vadd.f32 %v3212_v43, %v3211_v49 }
 0x20e   :  { %v2980_v3 = vadd.f32 %v2979_v20, %v2978_v13  ;;  %v3076_v13 = vrot.slane %v3075_v50, 1  ;;  %v3145_v20 = vrot.slane %v3144_v32, 1  ;;  %v3214_v6 = vrot.slane %v3213_v23, 1 }
 0x210   :  { %v2982_v53 = vadd.f32 %v2981_v42, %v2980_v3  ;;  %v3077_v42 = vadd.f32 %v3076_v13, %v3075_v50  ;;  %v3146_v22 = vadd.f32 %v3145_v20, %v3144_v32  ;;  %v3215_v30 = vadd.f32 %v3214_v6, %v3213_v23 }
 0x212   :  { %v2984_v8 = vadd.f32 %v2983_v26, %v2982_v53 }
 0x214   :  { %v2986_v54 = vadd.f32 %v2985_v62, %v2984_v8 }
 0x216   :  { %v2988_v14 = vadd.f32 %v2987_v16, %v2986_v54 }
 0x218   :  { %v2990_v61 = vadd.f32 %v2989_v9, %v2988_v14 }
 0x21a   :  { %v2992_v0 = vadd.f32 %v2991_v36, %v2990_v61 }
 0x21c   :  { %v2994_v10 = vadd.f32 %v2993_v56, %v2992_v0 }
 0x21e   :  { %v2996_v18 = vadd.f32 %v2995_v15, %v2994_v10 }
 0x220   :  { %v2998_v34 = vadd.f32 %v2997_v58, %v2996_v18 }
 0x222   :  { %v3000_v35 = vadd.f32 %v2999_v44, %v2998_v34 }
 0x224   :  { %v3002_v31 = vadd.f32 %v3001_v29, %v3000_v35 }
 0x226   :  { %v3003_v24 = vrot.slane %v3002_v31, 4 }
 0x228   :  { %v3004_v1 = vadd.f32 %v3003_v24, %v3002_v31 }
 0x22a   :  { %v3005_v28 = vrot.slane %v3004_v1, 2 }
 0x22c   :  { %v3006_v12 = vadd.f32 %v3005_v28, %v3004_v1 }
 0x22e   :  { %v3007_v33 = vrot.slane %v3006_v12, 1 }
 0x230   :  { %v3008_v3 = vadd.f32 %v3007_v33, %v3006_v12 }
 0x232   :  { %v3242_v47 = vsel %vm3241_vm7, %v3008_v3, %v6075_v19 }
 0x233   :  { %v3244_v53 = vsel %vm3243_vm8, %v3077_v42, %v3242_v47 }
 0x234   :  { %v3246_v26 = vsel %vm3245_vm9, %v3146_v22, %v3244_v53 }
 0x235   :  { %v3248_v59 = vsel %vm3247_vm10, %v3215_v30, %v3246_v26 }
 0x236   :  { %4265 = vmatmul.mubr.msk.f32.vlgmr.msra.gmra.mrb[126].mxu1 %vm2663_vm2, %v3248_v59 }
 0x309   :  { %v3317_v8 = vpop.f32.mrb[126].mxu1 }
 0x30a   :  { %v3318_v62 = vadd.f32 %v3594_v25, %v3317_v8  ;;  %v4266_v37 = vpop.f32.mrb[127].mxu1 }
 0x30c   :  { %3321 = vst [vmem:[#allocation2] sm:$0xff] %v3318_v62 }
 0x30d   :  { %4304 = shalt.err (!%p4301_p4)
}
 0x30e   :  { %s4305_s12 = scalar_lea.hbm %s6171_s5, 128 }
 0x30f   :  { %p4306_p5 = scmp.ne.s32.totalorder %s6171_s5, %s4305_s12  ;;  %p4309_p6 = scmp.lt.u32.totalorder %s4305_s12, %s6171_s5 }
 0x311   :  { %p4311_p7 = pnand %p4309_p6, %p4306_p5 }
 0x313   :  { %4314 = shalt.err (!%p4311_p7)
}
 0x314   :  { %3331 = dma.vmem_to_hbm [thread:$0]  %s3329_s9, 128, %s6171_s5, [#allocation3]  }
 0x315   :  { %4315 = dma.done.wait [#allocation3], 128  }
 0x316   :  { %4316 = vsyncadd [#allocation3], 4294967168 }
 0x317   :  { %3335 = vsyncpa [#allocation3], 1 }

</bundles_post_ra>
